<compile_context>
chip_gen: v7x
topology: tpu7x:2x2x1
jax: 0.10.0
libtpu: 0.0.40
codegen_flags: <defaults>
</compile_context>

<pallas_src>
import math
import jax
import jax.numpy as jnp
from jax.experimental import pallas as pl
from jax.experimental.pallas import tpu as pltpu

# ---- small synthetic config consistent with the module's __init__ ----
B = 2        # batch
S = 8        # sequence length
H = 32       # config.hidden_size
NH = 4       # attention heads
DH = H // NH
I = 64       # FFN intermediate size
L = 4        # num_labels
V = 100      # vocab size
TT = 2       # token-type vocab
LN_EPS = 1e-12
LANE = 128   # lane width: every slab row-block / matmul output is 128 wide
BS = B * S
SCALE = 1.0 / math.sqrt(DH)

# weight-slab row offsets (each block zero-padded to 128 cols)
R_QKV, R_WO, R_W1, R_W2, R_WM1, R_WM2, R_WP, R_WCLS = 0, 32, 64, 96, 160, 192, 224, 256
WSLAB_ROWS = 288
# bias/LN-slab row indices
(BR_LNE_G, BR_LNE_B, BR_QKV, BR_BO, BR_LN1_G, BR_LN1_B, BR_B1, BR_B2,
 BR_LN2_G, BR_LN2_B, BR_BM1, BR_BM2, BR_BP, BR_BCLS) = range(14)
BSLAB_ROWS = 16


def _layernorm(x, g, b):
    mu = jnp.mean(x, axis=-1, keepdims=True)
    var = jnp.mean((x - mu) * (x - mu), axis=-1, keepdims=True)
    return (x - mu) * jax.lax.rsqrt(var + LN_EPS) * g + b


def gccre_bert_tagger_kernel(emb_ref, bias_ref, w_ref, b_ref, logits_ref, aux_ref):
    f32 = jnp.float32
    # full-lane (128-wide) weight blocks and bias rows: unmasked VMEM loads
    W = lambda r0, nrows: w_ref[r0:r0 + nrows, :]          # (nrows, 128)
    brow = lambda r: b_ref[r:r + 1, :]                     # (1, 128) zero-padded
    bvec = lambda r, width: b_ref[r:r + 1, 0:width]        # exact-width LN param

    # ---- embedding LayerNorm on the batch-flattened (B*S, H) activation ----
    x = _layernorm(emb_ref[...], bvec(BR_LNE_G, H), bvec(BR_LNE_B, H))

    # ---- fused QKV: one MXU matmul for all batches and all of Q/K/V ----
    qkv = jnp.dot(x, W(R_QKV, H), preferred_element_type=f32) + brow(BR_QKV)
    q, k, v = qkv[:, 0:H], qkv[:, H:2 * H], qkv[:, 2 * H:3 * H]

    # ---- head-batched self-attention over all (batch, head) pairs at once ----
    def heads(t):  # (B*S, H) -> (B*NH, S, DH), index n = bi*NH + h
        return jnp.stack([t[bi * S:(bi + 1) * S, h * DH:(h + 1) * DH]
                          for bi in range(B) for h in range(NH)], axis=0)

    qh, kh, vh = heads(q), heads(k), heads(v)
    s = jnp.einsum('nqd,nkd->nqk', qh, kh, preferred_element_type=f32) * SCALE
    s = s + bias_ref[...]                                  # (B*NH, 1, S) key mask
    s = s - jnp.max(s, axis=-1, keepdims=True)
    p = jnp.exp(s)
    p = p * pl.reciprocal(jnp.sum(p, axis=-1, keepdims=True), approx=True)
    ctx_h = jnp.einsum('nqk,nkd->nqd', p, vh, preferred_element_type=f32)
    # reassemble (B*S, H) in registers: heads back on the lane axis, batches on rows
    ctx = jnp.concatenate(
        [jnp.concatenate([ctx_h[bi * NH + h] for h in range(NH)], axis=-1)
         for bi in range(B)], axis=0)

    attn = jnp.dot(ctx, W(R_WO, H), preferred_element_type=f32) + brow(BR_BO)
    x1 = _layernorm(x + attn[:, 0:H], bvec(BR_LN1_G, H), bvec(BR_LN1_B, H))

    # ---- FFN ----
    # TODO(synk): HF BERT default 'gelu' is the exact erf form; tanh approximation
    # is used here (~1e-3 activation delta) for guaranteed TPU lowering.
    hff = jnp.dot(x1, W(R_W1, H), preferred_element_type=f32) + brow(BR_B1)
    hff = jax.nn.gelu(hff[:, 0:I], approximate=True)
    ffn = jnp.dot(hff, W(R_W2, I), preferred_element_type=f32) + brow(BR_B2)
    feats = _layernorm(x1 + ffn[:, 0:H], bvec(BR_LN2_G, H), bvec(BR_LN2_B, H))

    # nn.Dropout(config.hidden_dropout_prob) == identity in eval mode.
    # classifier_sign == 'multi_nonlinear': Linear(H,H) -> gelu -> Linear(H,L)
    hm = jnp.dot(feats, W(R_WM1, H), preferred_element_type=f32) + brow(BR_BM1)
    hm = jax.nn.gelu(hm[:, 0:H], approximate=True)
    # lane-dense (16,128) store; cols L:128 are exact zeros (zero-padded W/b)
    logits_ref[...] = jnp.dot(hm, W(R_WM2, H), preferred_element_type=f32) + brow(BR_BM2)

    # ---- BERT-style pooler on [CLS] + GCCRE auxiliary classification head ----
    cls = jnp.concatenate([feats[bi * S:bi * S + 1, :] for bi in range(B)], axis=0)
    pooled = jnp.dot(cls, W(R_WP, H), preferred_element_type=f32) + brow(BR_BP)
    pooled = jnp.tanh(pooled[:, 0:H])
    aux_ref[...] = jnp.dot(pooled, W(R_WCLS, H), preferred_element_type=f32) + brow(BR_BCLS)


def init_params(key):
    keys = iter(jax.random.split(key, 32))
    nxt = lambda: next(keys)
    w = lambda shape: 0.02 * jax.random.normal(nxt(), shape, dtype=jnp.float32)
    zeros = lambda shape: jnp.zeros(shape, jnp.float32)
    ones = lambda shape: jnp.ones(shape, jnp.float32)
    return {
        "word_emb": w((V, H)), "pos_emb": w((S, H)), "type_emb": w((TT, H)),
        "ln_e_g": ones((1, H)), "ln_e_b": zeros((1, H)),
        "wq": w((H, H)), "bq": zeros((1, H)),
        "wk": w((H, H)), "bk": zeros((1, H)),
        "wv": w((H, H)), "bv": zeros((1, H)),
        "wo": w((H, H)), "bo": zeros((1, H)),
        "ln1_g": ones((1, H)), "ln1_b": zeros((1, H)),
        "w1": w((H, I)), "b1": zeros((1, I)),
        "w2": w((I, H)), "b2": zeros((1, H)),
        "ln2_g": ones((1, H)), "ln2_b": zeros((1, H)),
        "wp": w((H, H)), "bp": zeros((1, H)),
        "wcls": w((H, L)), "bcls": zeros((1, L)),
        "wm1": w((H, H)), "bm1": zeros((1, H)),
        "wm2": w((H, L)), "bm2": zeros((1, L)),
    }


def _pad_lane(a):
    return jnp.pad(a, ((0, 0), (0, LANE - a.shape[1])))


def _pack_params(params):
    """Pack the 26 weight/bias tensors into two 128-lane slabs (2 DMAs)."""
    wslab = jnp.concatenate([
        _pad_lane(jnp.concatenate([params["wq"], params["wk"], params["wv"]], axis=1)),
        _pad_lane(params["wo"]),
        _pad_lane(params["w1"]),
        _pad_lane(params["w2"]),
        _pad_lane(params["wm1"]),
        _pad_lane(params["wm2"]),
        _pad_lane(params["wp"]),
        _pad_lane(params["wcls"]),
    ], axis=0)
    brows = [
        params["ln_e_g"], params["ln_e_b"],
        jnp.concatenate([params["bq"], params["bk"], params["bv"]], axis=1),
        params["bo"], params["ln1_g"], params["ln1_b"],
        params["b1"], params["b2"], params["ln2_g"], params["ln2_b"],
        params["bm1"], params["bm2"], params["bp"], params["bcls"],
    ]
    bslab = jnp.concatenate([_pad_lane(r) for r in brows], axis=0)
    bslab = jnp.pad(bslab, ((0, BSLAB_ROWS - bslab.shape[0]), (0, 0)))
    return wslab, bslab


_FLOPS = (2 * BS * H * 3 * H            # fused QKV
          + 2 * (B * NH) * S * S * DH * 2   # scores + context
          + 2 * BS * H * H              # output projection
          + 2 * BS * H * I * 2          # FFN
          + 2 * BS * H * (H + L)        # multi-nonlinear classifier
          + 2 * B * H * (H + L))        # pooler + aux head
_TRANSCENDENTALS = (B * NH * S * S + BS * (I + H) + B * H + B * NH * S)
_BYTES = 4 * (BS * H + B * NH * S + WSLAB_ROWS * LANE + BSLAB_ROWS * LANE
              + BS * LANE + B * LANE)


def gccre_bert_tagger_forward(params, input_ids, token_type_ids=None,
                              attention_mask=None, labels=None):
    if token_type_ids is None:
        token_type_ids = jnp.zeros_like(input_ids)
    if attention_mask is None:
        attention_mask = jnp.ones_like(input_ids)

    positions = jnp.arange(S, dtype=jnp.int32)
    emb = (params["word_emb"][input_ids]
           + params["pos_emb"][positions][None, :, :]
           + params["type_emb"][token_type_ids]).astype(jnp.float32)
    emb = emb.reshape(BS, H)

    # BERT extended attention mask -> additive bias, replicated per head:
    # shape (B*NH, 1, S) with index n = bi*NH + h (matches kernel head packing).
    neg = (1.0 - attention_mask.astype(jnp.float32)) * -10000.0        # (B, S)
    attn_bias = jnp.repeat(neg[:, None, :], NH, axis=0)                # (B*NH, 1, S)

    wslab, bslab = _pack_params(params)

    logits_pad, aux_pad = pl.pallas_call(
        gccre_bert_tagger_kernel,
        out_shape=(jax.ShapeDtypeStruct((BS, LANE), jnp.float32),
                   jax.ShapeDtypeStruct((B, LANE), jnp.float32)),
        in_specs=[pl.BlockSpec(memory_space=pltpu.MemorySpace.VMEM)] * 4,
        out_specs=(pl.BlockSpec(memory_space=pltpu.MemorySpace.VMEM),
                   pl.BlockSpec(memory_space=pltpu.MemorySpace.VMEM)),
        cost_estimate=pl.CostEstimate(flops=_FLOPS,
                                      transcendentals=_TRANSCENDENTALS,
                                      bytes_accessed=_BYTES),
    )(emb, attn_bias, wslab, bslab)

    logits = logits_pad[:, :L].reshape(B, S, L)
    del aux_pad  # aux head output (pooled-CLS logits) — loss targets unknown
    # TODO(synk): GccreTransformer's internal gccre_cls_loss needs auxiliary GCCRE
    # targets not present in the provided source; return 0.0 placeholder.
    gccre_cls_loss = jnp.float32(0.0)

    if labels is not None:
        logp = jax.nn.log_softmax(logits.reshape(-1, L), axis=-1)
        nll = -jnp.take_along_axis(logp, labels.reshape(-1, 1), axis=-1)
        loss = jnp.mean(nll)  # CrossEntropyLoss(mean)
        return loss, gccre_cls_loss
    return logits, gccre_cls_loss


if __name__ == "__main__":
    key = jax.random.PRNGKey(0)
    pkey, ikey = jax.random.split(key)
    params = init_params(pkey)

    input_ids = jax.random.randint(ikey, (B, S), 0, V, dtype=jnp.int32)
    token_type_ids = jnp.zeros((B, S), jnp.int32)
    attention_mask = jnp.ones((B, S), jnp.int32)

    logits, gccre_cls_loss = gccre_bert_tagger_forward(
        params, input_ids, token_type_ids=token_type_ids,
        attention_mask=attention_mask)
    jax.block_until_ready((logits, gccre_cls_loss))
    assert logits.shape == (B, S, L)
    print("KERNEL_OK")
</pallas_src>

<mosaic_0001>
module attributes {stable_mosaic.version = 11 : i64} {
  func.func @gccre_bert_tagger_kernel(%arg0: memref<16x32xf32, #tpu.memory_space<vmem>>, %arg1: memref<8x1x8xf32, #tpu.memory_space<vmem>>, %arg2: memref<288x128xf32, #tpu.memory_space<vmem>>, %arg3: memref<16x128xf32, #tpu.memory_space<vmem>>, %arg4: memref<16x128xf32, #tpu.memory_space<vmem>>, %arg5: memref<2x128xf32, #tpu.memory_space<vmem>>) attributes {dimension_semantics = [], scalar_prefetch = 0 : i64, scratch_operands = 0 : i64, tpu.core_type = #tpu.core_type<tc>} {
    %c0 = arith.constant 0 : index
    %c0_0 = arith.constant 0 : index
    %0 = vector.load %arg0[%c0, %c0_0] : memref<16x32xf32, #tpu.memory_space<vmem>>, vector<16x32xf32>
    %c0_1 = arith.constant 0 : index
    %c0_2 = arith.constant 0 : index
    %1 = vector.load %arg3[%c0_1, %c0_2] : memref<16x128xf32, #tpu.memory_space<vmem>>, vector<1x32xf32>
    %c1 = arith.constant 1 : index
    %c0_3 = arith.constant 0 : index
    %2 = vector.load %arg3[%c1, %c0_3] : memref<16x128xf32, #tpu.memory_space<vmem>>, vector<1x32xf32>
    %cst = arith.constant dense<0.000000e+00> : vector<16xf32>
    %3 = vector.multi_reduction <add>, %0, %cst [1] : vector<16x32xf32> to vector<16xf32>
    %4 = vector.shape_cast %3 : vector<16xf32> to vector<16x1xf32>
    %cst_4 = arith.constant 3.200000e+01 : f32
    %5 = vector.broadcast %cst_4 : f32 to vector<16x1xf32>
    %6 = arith.divf %4, %5 : vector<16x1xf32>
    %7 = vector.broadcast %6 : vector<16x1xf32> to vector<16x32xf32>
    %8 = arith.subf %0, %7 : vector<16x32xf32>
    %9 = vector.broadcast %6 : vector<16x1xf32> to vector<16x32xf32>
    %10 = arith.subf %0, %9 : vector<16x32xf32>
    %11 = arith.mulf %8, %10 : vector<16x32xf32>
    %cst_5 = arith.constant dense<0.000000e+00> : vector<16xf32>
    %12 = vector.multi_reduction <add>, %11, %cst_5 [1] : vector<16x32xf32> to vector<16xf32>
    %13 = vector.shape_cast %12 : vector<16xf32> to vector<16x1xf32>
    %cst_6 = arith.constant 3.200000e+01 : f32
    %14 = vector.broadcast %cst_6 : f32 to vector<16x1xf32>
    %15 = arith.divf %13, %14 : vector<16x1xf32>
    %16 = vector.broadcast %6 : vector<16x1xf32> to vector<16x32xf32>
    %17 = arith.subf %0, %16 : vector<16x32xf32>
    %cst_7 = arith.constant 9.99999996E-13 : f32
    %18 = vector.broadcast %cst_7 : f32 to vector<16x1xf32>
    %19 = arith.addf %15, %18 : vector<16x1xf32>
    %20 = math.rsqrt %19 : vector<16x1xf32>
    %21 = vector.broadcast %20 : vector<16x1xf32> to vector<16x32xf32>
    %22 = arith.mulf %17, %21 : vector<16x32xf32>
    %23 = vector.broadcast %1 : vector<1x32xf32> to vector<16x32xf32>
    %24 = arith.mulf %22, %23 : vector<16x32xf32>
    %25 = vector.broadcast %2 : vector<1x32xf32> to vector<16x32xf32>
    %26 = arith.addf %24, %25 : vector<16x32xf32>
    %c0_8 = arith.constant 0 : index
    %c0_9 = arith.constant 0 : index
    %27 = vector.load %arg2[%c0_8, %c0_9] : memref<288x128xf32, #tpu.memory_space<vmem>>, vector<32x128xf32>
    %cst_10 = arith.constant dense<0.000000e+00> : vector<16x128xf32>
    %28 = tpu.matmul %26, %27, %cst_10 {dimension_numbers = #tpu.dot_dimension_numbers<[1], [0], [0], [1], [0, 0, 1, 1], [], []>} : vector<16x32xf32>, vector<32x128xf32>, vector<16x128xf32> -> vector<16x128xf32>
    %c2 = arith.constant 2 : index
    %c0_11 = arith.constant 0 : index
    %29 = vector.load %arg3[%c2, %c0_11] : memref<16x128xf32, #tpu.memory_space<vmem>>, vector<1x128xf32>
    %30 = vector.broadcast %29 : vector<1x128xf32> to vector<16x128xf32>
    %31 = arith.addf %28, %30 : vector<16x128xf32>
    %32 = vector.extract_strided_slice %31 {offsets = [0, 0], sizes = [16, 32], strides = [1, 1]} : vector<16x128xf32> to vector<16x32xf32>
    %33 = vector.extract_strided_slice %31 {offsets = [0, 32], sizes = [16, 32], strides = [1, 1]} : vector<16x128xf32> to vector<16x32xf32>
    %34 = vector.extract_strided_slice %31 {offsets = [0, 64], sizes = [16, 32], strides = [1, 1]} : vector<16x128xf32> to vector<16x32xf32>
    %35 = vector.extract_strided_slice %32 {offsets = [0, 0], sizes = [8, 8], strides = [1, 1]} : vector<16x32xf32> to vector<8x8xf32>
    %36 = vector.extract_strided_slice %32 {offsets = [0, 8], sizes = [8, 8], strides = [1, 1]} : vector<16x32xf32> to vector<8x8xf32>
    %37 = vector.extract_strided_slice %32 {offsets = [0, 16], sizes = [8, 8], strides = [1, 1]} : vector<16x32xf32> to vector<8x8xf32>
    %38 = vector.extract_strided_slice %32 {offsets = [0, 24], sizes = [8, 8], strides = [1, 1]} : vector<16x32xf32> to vector<8x8xf32>
    %39 = vector.extract_strided_slice %32 {offsets = [8, 0], sizes = [8, 8], strides = [1, 1]} : vector<16x32xf32> to vector<8x8xf32>
    %40 = vector.extract_strided_slice %32 {offsets = [8, 8], sizes = [8, 8], strides = [1, 1]} : vector<16x32xf32> to vector<8x8xf32>
    %41 = vector.extract_strided_slice %32 {offsets = [8, 16], sizes = [8, 8], strides = [1, 1]} : vector<16x32xf32> to vector<8x8xf32>
    %42 = vector.extract_strided_slice %32 {offsets = [8, 24], sizes = [8, 8], strides = [1, 1]} : vector<16x32xf32> to vector<8x8xf32>
    %43 = vector.shape_cast %35 : vector<8x8xf32> to vector<1x8x8xf32>
    %44 = vector.shape_cast %36 : vector<8x8xf32> to vector<1x8x8xf32>
    %45 = vector.shape_cast %37 : vector<8x8xf32> to vector<1x8x8xf32>
    %46 = vector.shape_cast %38 : vector<8x8xf32> to vector<1x8x8xf32>
    %47 = vector.shape_cast %39 : vector<8x8xf32> to vector<1x8x8xf32>
    %48 = vector.shape_cast %40 : vector<8x8xf32> to vector<1x8x8xf32>
    %49 = vector.shape_cast %41 : vector<8x8xf32> to vector<1x8x8xf32>
    %50 = vector.shape_cast %42 : vector<8x8xf32> to vector<1x8x8xf32>
    %51 = tpu.concatenate %43, %44, %45, %46, %47, %48, %49, %50 in 0 : vector<1x8x8xf32>, vector<1x8x8xf32>, vector<1x8x8xf32>, vector<1x8x8xf32>, vector<1x8x8xf32>, vector<1x8x8xf32>, vector<1x8x8xf32>, vector<1x8x8xf32> -> vector<8x8x8xf32>
    %52 = vector.extract_strided_slice %33 {offsets = [0, 0], sizes = [8, 8], strides = [1, 1]} : vector<16x32xf32> to vector<8x8xf32>
    %53 = vector.extract_strided_slice %33 {offsets = [0, 8], sizes = [8, 8], strides = [1, 1]} : vector<16x32xf32> to vector<8x8xf32>
    %54 = vector.extract_strided_slice %33 {offsets = [0, 16], sizes = [8, 8], strides = [1, 1]} : vector<16x32xf32> to vector<8x8xf32>
    %55 = vector.extract_strided_slice %33 {offsets = [0, 24], sizes = [8, 8], strides = [1, 1]} : vector<16x32xf32> to vector<8x8xf32>
    %56 = vector.extract_strided_slice %33 {offsets = [8, 0], sizes = [8, 8], strides = [1, 1]} : vector<16x32xf32> to vector<8x8xf32>
    %57 = vector.extract_strided_slice %33 {offsets = [8, 8], sizes = [8, 8], strides = [1, 1]} : vector<16x32xf32> to vector<8x8xf32>
    %58 = vector.extract_strided_slice %33 {offsets = [8, 16], sizes = [8, 8], strides = [1, 1]} : vector<16x32xf32> to vector<8x8xf32>
    %59 = vector.extract_strided_slice %33 {offsets = [8, 24], sizes = [8, 8], strides = [1, 1]} : vector<16x32xf32> to vector<8x8xf32>
    %60 = vector.shape_cast %52 : vector<8x8xf32> to vector<1x8x8xf32>
    %61 = vector.shape_cast %53 : vector<8x8xf32> to vector<1x8x8xf32>
    %62 = vector.shape_cast %54 : vector<8x8xf32> to vector<1x8x8xf32>
    %63 = vector.shape_cast %55 : vector<8x8xf32> to vector<1x8x8xf32>
    %64 = vector.shape_cast %56 : vector<8x8xf32> to vector<1x8x8xf32>
    %65 = vector.shape_cast %57 : vector<8x8xf32> to vector<1x8x8xf32>
    %66 = vector.shape_cast %58 : vector<8x8xf32> to vector<1x8x8xf32>
    %67 = vector.shape_cast %59 : vector<8x8xf32> to vector<1x8x8xf32>
    %68 = tpu.concatenate %60, %61, %62, %63, %64, %65, %66, %67 in 0 : vector<1x8x8xf32>, vector<1x8x8xf32>, vector<1x8x8xf32>, vector<1x8x8xf32>, vector<1x8x8xf32>, vector<1x8x8xf32>, vector<1x8x8xf32>, vector<1x8x8xf32> -> vector<8x8x8xf32>
    %69 = vector.extract_strided_slice %34 {offsets = [0, 0], sizes = [8, 8], strides = [1, 1]} : vector<16x32xf32> to vector<8x8xf32>
    %70 = vector.extract_strided_slice %34 {offsets = [0, 8], sizes = [8, 8], strides = [1, 1]} : vector<16x32xf32> to vector<8x8xf32>
    %71 = vector.extract_strided_slice %34 {offsets = [0, 16], sizes = [8, 8], strides = [1, 1]} : vector<16x32xf32> to vector<8x8xf32>
    %72 = vector.extract_strided_slice %34 {offsets = [0, 24], sizes = [8, 8], strides = [1, 1]} : vector<16x32xf32> to vector<8x8xf32>
    %73 = vector.extract_strided_slice %34 {offsets = [8, 0], sizes = [8, 8], strides = [1, 1]} : vector<16x32xf32> to vector<8x8xf32>
    %74 = vector.extract_strided_slice %34 {offsets = [8, 8], sizes = [8, 8], strides = [1, 1]} : vector<16x32xf32> to vector<8x8xf32>
    %75 = vector.extract_strided_slice %34 {offsets = [8, 16], sizes = [8, 8], strides = [1, 1]} : vector<16x32xf32> to vector<8x8xf32>
    %76 = vector.extract_strided_slice %34 {offsets = [8, 24], sizes = [8, 8], strides = [1, 1]} : vector<16x32xf32> to vector<8x8xf32>
    %77 = vector.shape_cast %69 : vector<8x8xf32> to vector<1x8x8xf32>
    %78 = vector.shape_cast %70 : vector<8x8xf32> to vector<1x8x8xf32>
    %79 = vector.shape_cast %71 : vector<8x8xf32> to vector<1x8x8xf32>
    %80 = vector.shape_cast %72 : vector<8x8xf32> to vector<1x8x8xf32>
    %81 = vector.shape_cast %73 : vector<8x8xf32> to vector<1x8x8xf32>
    %82 = vector.shape_cast %74 : vector<8x8xf32> to vector<1x8x8xf32>
    %83 = vector.shape_cast %75 : vector<8x8xf32> to vector<1x8x8xf32>
    %84 = vector.shape_cast %76 : vector<8x8xf32> to vector<1x8x8xf32>
    %85 = tpu.concatenate %77, %78, %79, %80, %81, %82, %83, %84 in 0 : vector<1x8x8xf32>, vector<1x8x8xf32>, vector<1x8x8xf32>, vector<1x8x8xf32>, vector<1x8x8xf32>, vector<1x8x8xf32>, vector<1x8x8xf32>, vector<1x8x8xf32> -> vector<8x8x8xf32>
    "tpu.trace_start"() <{level = 10 : i32, message = "nqd,nkd->nqk"}> : () -> ()
    %cst_12 = arith.constant dense<0.000000e+00> : vector<8x8x8xf32>
    %86 = tpu.matmul %51, %68, %cst_12 {dimension_numbers = #tpu.dot_dimension_numbers<[2], [2], [1], [1], [0, 0, 0, 1, 1, 1], [0], [0]>} : vector<8x8x8xf32>, vector<8x8x8xf32>, vector<8x8x8xf32> -> vector<8x8x8xf32>
    "tpu.trace_stop"() : () -> ()
    %cst_13 = arith.constant 0.353553385 : f32
    %87 = vector.broadcast %cst_13 : f32 to vector<8x8x8xf32>
    %88 = arith.mulf %86, %87 : vector<8x8x8xf32>
    %c0_14 = arith.constant 0 : index
    %c0_15 = arith.constant 0 : index
    %c0_16 = arith.constant 0 : index
    %89 = vector.load %arg1[%c0_14, %c0_15, %c0_16] : memref<8x1x8xf32, #tpu.memory_space<vmem>>, vector<8x1x8xf32>
    %90 = vector.broadcast %89 : vector<8x1x8xf32> to vector<8x8x8xf32>
    %91 = arith.addf %88, %90 : vector<8x8x8xf32>
    %cst_17 = arith.constant dense<0xFF800000> : vector<8x8xf32>
    %92 = vector.multi_reduction <maximumf>, %91, %cst_17 [2] : vector<8x8x8xf32> to vector<8x8xf32>
    %93 = vector.shape_cast %92 : vector<8x8xf32> to vector<8x8x1xf32>
    %94 = vector.broadcast %93 : vector<8x8x1xf32> to vector<8x8x8xf32>
    %95 = arith.subf %91, %94 : vector<8x8x8xf32>
    %96 = math.exp %95 : vector<8x8x8xf32>
    %cst_18 = arith.constant dense<0.000000e+00> : vector<8x8xf32>
    %97 = vector.multi_reduction <add>, %96, %cst_18 [2] : vector<8x8x8xf32> to vector<8x8xf32>
    %98 = vector.shape_cast %97 : vector<8x8xf32> to vector<8x8x1xf32>
    %99 = tpu.reciprocal %98 {approx = true} : vector<8x8x1xf32> -> vector<8x8x1xf32>
    %100 = vector.broadcast %99 : vector<8x8x1xf32> to vector<8x8x8xf32>
    %101 = arith.mulf %96, %100 : vector<8x8x8xf32>
    "tpu.trace_start"() <{level = 10 : i32, message = "nqk,nkd->nqd"}> : () -> ()
    %cst_19 = arith.constant dense<0.000000e+00> : vector<8x8x8xf32>
    %102 = tpu.matmul %101, %85, %cst_19 {dimension_numbers = #tpu.dot_dimension_numbers<[2], [1], [1], [2], [0, 0, 0, 1, 1, 2], [0], [0]>} : vector<8x8x8xf32>, vector<8x8x8xf32>, vector<8x8x8xf32> -> vector<8x8x8xf32>
    "tpu.trace_stop"() : () -> ()
    %103 = vector.extract_strided_slice %102 {offsets = [0, 0, 0], sizes = [1, 8, 8], strides = [1, 1, 1]} : vector<8x8x8xf32> to vector<1x8x8xf32>
    %104 = vector.shape_cast %103 : vector<1x8x8xf32> to vector<8x8xf32>
    %105 = vector.extract_strided_slice %102 {offsets = [1, 0, 0], sizes = [1, 8, 8], strides = [1, 1, 1]} : vector<8x8x8xf32> to vector<1x8x8xf32>
    %106 = vector.shape_cast %105 : vector<1x8x8xf32> to vector<8x8xf32>
    %107 = vector.extract_strided_slice %102 {offsets = [2, 0, 0], sizes = [1, 8, 8], strides = [1, 1, 1]} : vector<8x8x8xf32> to vector<1x8x8xf32>
    %108 = vector.shape_cast %107 : vector<1x8x8xf32> to vector<8x8xf32>
    %109 = vector.extract_strided_slice %102 {offsets = [3, 0, 0], sizes = [1, 8, 8], strides = [1, 1, 1]} : vector<8x8x8xf32> to vector<1x8x8xf32>
    %110 = vector.shape_cast %109 : vector<1x8x8xf32> to vector<8x8xf32>
    %111 = tpu.concatenate %104, %106, %108, %110 in 1 : vector<8x8xf32>, vector<8x8xf32>, vector<8x8xf32>, vector<8x8xf32> -> vector<8x32xf32>
    %112 = vector.extract_strided_slice %102 {offsets = [4, 0, 0], sizes = [1, 8, 8], strides = [1, 1, 1]} : vector<8x8x8xf32> to vector<1x8x8xf32>
    %113 = vector.shape_cast %112 : vector<1x8x8xf32> to vector<8x8xf32>
    %114 = vector.extract_strided_slice %102 {offsets = [5, 0, 0], sizes = [1, 8, 8], strides = [1, 1, 1]} : vector<8x8x8xf32> to vector<1x8x8xf32>
    %115 = vector.shape_cast %114 : vector<1x8x8xf32> to vector<8x8xf32>
    %116 = vector.extract_strided_slice %102 {offsets = [6, 0, 0], sizes = [1, 8, 8], strides = [1, 1, 1]} : vector<8x8x8xf32> to vector<1x8x8xf32>
    %117 = vector.shape_cast %116 : vector<1x8x8xf32> to vector<8x8xf32>
    %118 = vector.extract_strided_slice %102 {offsets = [7, 0, 0], sizes = [1, 8, 8], strides = [1, 1, 1]} : vector<8x8x8xf32> to vector<1x8x8xf32>
    %119 = vector.shape_cast %118 : vector<1x8x8xf32> to vector<8x8xf32>
    %120 = tpu.concatenate %113, %115, %117, %119 in 1 : vector<8x8xf32>, vector<8x8xf32>, vector<8x8xf32>, vector<8x8xf32> -> vector<8x32xf32>
    %121 = tpu.concatenate %111, %120 in 0 : vector<8x32xf32>, vector<8x32xf32> -> vector<16x32xf32>
    %c32 = arith.constant 32 : index
    %c0_20 = arith.constant 0 : index
    %122 = vector.load %arg2[%c32, %c0_20] : memref<288x128xf32, #tpu.memory_space<vmem>>, vector<32x128xf32>
    %cst_21 = arith.constant dense<0.000000e+00> : vector<16x128xf32>
    %123 = tpu.matmul %121, %122, %cst_21 {dimension_numbers = #tpu.dot_dimension_numbers<[1], [0], [0], [1], [0, 0, 1, 1], [], []>} : vector<16x32xf32>, vector<32x128xf32>, vector<16x128xf32> -> vector<16x128xf32>
    %c3 = arith.constant 3 : index
    %c0_22 = arith.constant 0 : index
    %124 = vector.load %arg3[%c3, %c0_22] : memref<16x128xf32, #tpu.memory_space<vmem>>, vector<1x128xf32>
    %125 = vector.broadcast %124 : vector<1x128xf32> to vector<16x128xf32>
    %126 = arith.addf %123, %125 : vector<16x128xf32>
    %127 = vector.extract_strided_slice %126 {offsets = [0, 0], sizes = [16, 32], strides = [1, 1]} : vector<16x128xf32> to vector<16x32xf32>
    %128 = arith.addf %26, %127 : vector<16x32xf32>
    %c4 = arith.constant 4 : index
    %c0_23 = arith.constant 0 : index
    %129 = vector.load %arg3[%c4, %c0_23] : memref<16x128xf32, #tpu.memory_space<vmem>>, vector<1x32xf32>
    %c5 = arith.constant 5 : index
    %c0_24 = arith.constant 0 : index
    %130 = vector.load %arg3[%c5, %c0_24] : memref<16x128xf32, #tpu.memory_space<vmem>>, vector<1x32xf32>
    %cst_25 = arith.constant dense<0.000000e+00> : vector<16xf32>
    %131 = vector.multi_reduction <add>, %128, %cst_25 [1] : vector<16x32xf32> to vector<16xf32>
    %132 = vector.shape_cast %131 : vector<16xf32> to vector<16x1xf32>
    %cst_26 = arith.constant 3.200000e+01 : f32
    %133 = vector.broadcast %cst_26 : f32 to vector<16x1xf32>
    %134 = arith.divf %132, %133 : vector<16x1xf32>
    %135 = vector.broadcast %134 : vector<16x1xf32> to vector<16x32xf32>
    %136 = arith.subf %128, %135 : vector<16x32xf32>
    %137 = vector.broadcast %134 : vector<16x1xf32> to vector<16x32xf32>
    %138 = arith.subf %128, %137 : vector<16x32xf32>
    %139 = arith.mulf %136, %138 : vector<16x32xf32>
    %cst_27 = arith.constant dense<0.000000e+00> : vector<16xf32>
    %140 = vector.multi_reduction <add>, %139, %cst_27 [1] : vector<16x32xf32> to vector<16xf32>
    %141 = vector.shape_cast %140 : vector<16xf32> to vector<16x1xf32>
    %cst_28 = arith.constant 3.200000e+01 : f32
    %142 = vector.broadcast %cst_28 : f32 to vector<16x1xf32>
    %143 = arith.divf %141, %142 : vector<16x1xf32>
    %144 = vector.broadcast %134 : vector<16x1xf32> to vector<16x32xf32>
    %145 = arith.subf %128, %144 : vector<16x32xf32>
    %cst_29 = arith.constant 9.99999996E-13 : f32
    %146 = vector.broadcast %cst_29 : f32 to vector<16x1xf32>
    %147 = arith.addf %143, %146 : vector<16x1xf32>
    %148 = math.rsqrt %147 : vector<16x1xf32>
    %149 = vector.broadcast %148 : vector<16x1xf32> to vector<16x32xf32>
    %150 = arith.mulf %145, %149 : vector<16x32xf32>
    %151 = vector.broadcast %129 : vector<1x32xf32> to vector<16x32xf32>
    %152 = arith.mulf %150, %151 : vector<16x32xf32>
    %153 = vector.broadcast %130 : vector<1x32xf32> to vector<16x32xf32>
    %154 = arith.addf %152, %153 : vector<16x32xf32>
    %c64 = arith.constant 64 : index
    %c0_30 = arith.constant 0 : index
    %155 = vector.load %arg2[%c64, %c0_30] : memref<288x128xf32, #tpu.memory_space<vmem>>, vector<32x128xf32>
    %cst_31 = arith.constant dense<0.000000e+00> : vector<16x128xf32>
    %156 = tpu.matmul %154, %155, %cst_31 {dimension_numbers = #tpu.dot_dimension_numbers<[1], [0], [0], [1], [0, 0, 1, 1], [], []>} : vector<16x32xf32>, vector<32x128xf32>, vector<16x128xf32> -> vector<16x128xf32>
    %c6 = arith.constant 6 : index
    %c0_32 = arith.constant 0 : index
    %157 = vector.load %arg3[%c6, %c0_32] : memref<16x128xf32, #tpu.memory_space<vmem>>, vector<1x128xf32>
    %158 = vector.broadcast %157 : vector<1x128xf32> to vector<16x128xf32>
    %159 = arith.addf %156, %158 : vector<16x128xf32>
    %160 = vector.extract_strided_slice %159 {offsets = [0, 0], sizes = [16, 64], strides = [1, 1]} : vector<16x128xf32> to vector<16x64xf32>
    %161 = arith.mulf %160, %160 : vector<16x64xf32>
    %162 = arith.mulf %160, %161 : vector<16x64xf32>
    %cst_33 = arith.constant 4.471500e-02 : f32
    %163 = vector.broadcast %cst_33 : f32 to vector<16x64xf32>
    %164 = arith.mulf %163, %162 : vector<16x64xf32>
    %165 = arith.addf %160, %164 : vector<16x64xf32>
    %cst_34 = arith.constant 0.797884583 : f32
    %166 = vector.broadcast %cst_34 : f32 to vector<16x64xf32>
    %167 = arith.mulf %166, %165 : vector<16x64xf32>
    %168 = math.tanh %167 : vector<16x64xf32>
    %cst_35 = arith.constant 1.000000e+00 : f32
    %169 = vector.broadcast %cst_35 : f32 to vector<16x64xf32>
    %170 = arith.addf %169, %168 : vector<16x64xf32>
    %cst_36 = arith.constant 5.000000e-01 : f32
    %171 = vector.broadcast %cst_36 : f32 to vector<16x64xf32>
    %172 = arith.mulf %171, %170 : vector<16x64xf32>
    %173 = arith.mulf %160, %172 : vector<16x64xf32>
    %c96 = arith.constant 96 : index
    %c0_37 = arith.constant 0 : index
    %174 = vector.load %arg2[%c96, %c0_37] : memref<288x128xf32, #tpu.memory_space<vmem>>, vector<64x128xf32>
    %cst_38 = arith.constant dense<0.000000e+00> : vector<16x128xf32>
    %175 = tpu.matmul %173, %174, %cst_38 {dimension_numbers = #tpu.dot_dimension_numbers<[1], [0], [0], [1], [0, 0, 1, 1], [], []>} : vector<16x64xf32>, vector<64x128xf32>, vector<16x128xf32> -> vector<16x128xf32>
    %c7 = arith.constant 7 : index
    %c0_39 = arith.constant 0 : index
    %176 = vector.load %arg3[%c7, %c0_39] : memref<16x128xf32, #tpu.memory_space<vmem>>, vector<1x128xf32>
    %177 = vector.broadcast %176 : vector<1x128xf32> to vector<16x128xf32>
    %178 = arith.addf %175, %177 : vector<16x128xf32>
    %179 = vector.extract_strided_slice %178 {offsets = [0, 0], sizes = [16, 32], strides = [1, 1]} : vector<16x128xf32> to vector<16x32xf32>
    %180 = arith.addf %154, %179 : vector<16x32xf32>
    %c8 = arith.constant 8 : index
    %c0_40 = arith.constant 0 : index
    %181 = vector.load %arg3[%c8, %c0_40] : memref<16x128xf32, #tpu.memory_space<vmem>>, vector<1x32xf32>
    %c9 = arith.constant 9 : index
    %c0_41 = arith.constant 0 : index
    %182 = vector.load %arg3[%c9, %c0_41] : memref<16x128xf32, #tpu.memory_space<vmem>>, vector<1x32xf32>
    %cst_42 = arith.constant dense<0.000000e+00> : vector<16xf32>
    %183 = vector.multi_reduction <add>, %180, %cst_42 [1] : vector<16x32xf32> to vector<16xf32>
    %184 = vector.shape_cast %183 : vector<16xf32> to vector<16x1xf32>
    %cst_43 = arith.constant 3.200000e+01 : f32
    %185 = vector.broadcast %cst_43 : f32 to vector<16x1xf32>
    %186 = arith.divf %184, %185 : vector<16x1xf32>
    %187 = vector.broadcast %186 : vector<16x1xf32> to vector<16x32xf32>
    %188 = arith.subf %180, %187 : vector<16x32xf32>
    %189 = vector.broadcast %186 : vector<16x1xf32> to vector<16x32xf32>
    %190 = arith.subf %180, %189 : vector<16x32xf32>
    %191 = arith.mulf %188, %190 : vector<16x32xf32>
    %cst_44 = arith.constant dense<0.000000e+00> : vector<16xf32>
    %192 = vector.multi_reduction <add>, %191, %cst_44 [1] : vector<16x32xf32> to vector<16xf32>
    %193 = vector.shape_cast %192 : vector<16xf32> to vector<16x1xf32>
    %cst_45 = arith.constant 3.200000e+01 : f32
    %194 = vector.broadcast %cst_45 : f32 to vector<16x1xf32>
    %195 = arith.divf %193, %194 : vector<16x1xf32>
    %196 = vector.broadcast %186 : vector<16x1xf32> to vector<16x32xf32>
    %197 = arith.subf %180, %196 : vector<16x32xf32>
    %cst_46 = arith.constant 9.99999996E-13 : f32
    %198 = vector.broadcast %cst_46 : f32 to vector<16x1xf32>
    %199 = arith.addf %195, %198 : vector<16x1xf32>
    %200 = math.rsqrt %199 : vector<16x1xf32>
    %201 = vector.broadcast %200 : vector<16x1xf32> to vector<16x32xf32>
    %202 = arith.mulf %197, %201 : vector<16x32xf32>
    %203 = vector.broadcast %181 : vector<1x32xf32> to vector<16x32xf32>
    %204 = arith.mulf %202, %203 : vector<16x32xf32>
    %205 = vector.broadcast %182 : vector<1x32xf32> to vector<16x32xf32>
    %206 = arith.addf %204, %205 : vector<16x32xf32>
    %c160 = arith.constant 160 : index
    %c0_47 = arith.constant 0 : index
    %207 = vector.load %arg2[%c160, %c0_47] : memref<288x128xf32, #tpu.memory_space<vmem>>, vector<32x128xf32>
    %cst_48 = arith.constant dense<0.000000e+00> : vector<16x128xf32>
    %208 = tpu.matmul %206, %207, %cst_48 {dimension_numbers = #tpu.dot_dimension_numbers<[1], [0], [0], [1], [0, 0, 1, 1], [], []>} : vector<16x32xf32>, vector<32x128xf32>, vector<16x128xf32> -> vector<16x128xf32>
    %c10 = arith.constant 10 : index
    %c0_49 = arith.constant 0 : index
    %209 = vector.load %arg3[%c10, %c0_49] : memref<16x128xf32, #tpu.memory_space<vmem>>, vector<1x128xf32>
    %210 = vector.broadcast %209 : vector<1x128xf32> to vector<16x128xf32>
    %211 = arith.addf %208, %210 : vector<16x128xf32>
    %212 = vector.extract_strided_slice %211 {offsets = [0, 0], sizes = [16, 32], strides = [1, 1]} : vector<16x128xf32> to vector<16x32xf32>
    %213 = arith.mulf %212, %212 : vector<16x32xf32>
    %214 = arith.mulf %212, %213 : vector<16x32xf32>
    %cst_50 = arith.constant 4.471500e-02 : f32
    %215 = vector.broadcast %cst_50 : f32 to vector<16x32xf32>
    %216 = arith.mulf %215, %214 : vector<16x32xf32>
    %217 = arith.addf %212, %216 : vector<16x32xf32>
    %cst_51 = arith.constant 0.797884583 : f32
    %218 = vector.broadcast %cst_51 : f32 to vector<16x32xf32>
    %219 = arith.mulf %218, %217 : vector<16x32xf32>
    %220 = math.tanh %219 : vector<16x32xf32>
    %cst_52 = arith.constant 1.000000e+00 : f32
    %221 = vector.broadcast %cst_52 : f32 to vector<16x32xf32>
    %222 = arith.addf %221, %220 : vector<16x32xf32>
    %cst_53 = arith.constant 5.000000e-01 : f32
    %223 = vector.broadcast %cst_53 : f32 to vector<16x32xf32>
    %224 = arith.mulf %223, %222 : vector<16x32xf32>
    %225 = arith.mulf %212, %224 : vector<16x32xf32>
    %c192 = arith.constant 192 : index
    %c0_54 = arith.constant 0 : index
    %226 = vector.load %arg2[%c192, %c0_54] : memref<288x128xf32, #tpu.memory_space<vmem>>, vector<32x128xf32>
    %cst_55 = arith.constant dense<0.000000e+00> : vector<16x128xf32>
    %227 = tpu.matmul %225, %226, %cst_55 {dimension_numbers = #tpu.dot_dimension_numbers<[1], [0], [0], [1], [0, 0, 1, 1], [], []>} : vector<16x32xf32>, vector<32x128xf32>, vector<16x128xf32> -> vector<16x128xf32>
    %c11 = arith.constant 11 : index
    %c0_56 = arith.constant 0 : index
    %228 = vector.load %arg3[%c11, %c0_56] : memref<16x128xf32, #tpu.memory_space<vmem>>, vector<1x128xf32>
    %229 = vector.broadcast %228 : vector<1x128xf32> to vector<16x128xf32>
    %230 = arith.addf %227, %229 : vector<16x128xf32>
    %c0_57 = arith.constant 0 : index
    %c0_58 = arith.constant 0 : index
    %231 = vector.load %arg4[%c0_57, %c0_58] : memref<16x128xf32, #tpu.memory_space<vmem>>, vector<16x128xf32>
    tpu.vector_store %arg4[%c0_57, %c0_58], %230 {strides = array<i32>} : memref<16x128xf32, #tpu.memory_space<vmem>>, vector<16x128xf32>,
    %232 = vector.extract_strided_slice %206 {offsets = [0, 0], sizes = [1, 32], strides = [1, 1]} : vector<16x32xf32> to vector<1x32xf32>
    %233 = vector.extract_strided_slice %206 {offsets = [8, 0], sizes = [1, 32], strides = [1, 1]} : vector<16x32xf32> to vector<1x32xf32>
    %234 = tpu.concatenate %232, %233 in 0 : vector<1x32xf32>, vector<1x32xf32> -> vector<2x32xf32>
    %c224 = arith.constant 224 : index
    %c0_59 = arith.constant 0 : index
    %235 = vector.load %arg2[%c224, %c0_59] : memref<288x128xf32, #tpu.memory_space<vmem>>, vector<32x128xf32>
    %cst_60 = arith.constant dense<0.000000e+00> : vector<2x128xf32>
    %236 = tpu.matmul %234, %235, %cst_60 {dimension_numbers = #tpu.dot_dimension_numbers<[1], [0], [0], [1], [0, 0, 1, 1], [], []>} : vector<2x32xf32>, vector<32x128xf32>, vector<2x128xf32> -> vector<2x128xf32>
    %c12 = arith.constant 12 : index
    %c0_61 = arith.constant 0 : index
    %237 = vector.load %arg3[%c12, %c0_61] : memref<16x128xf32, #tpu.memory_space<vmem>>, vector<1x128xf32>
    %238 = vector.broadcast %237 : vector<1x128xf32> to vector<2x128xf32>
    %239 = arith.addf %236, %238 : vector<2x128xf32>
    %240 = vector.extract_strided_slice %239 {offsets = [0, 0], sizes = [2, 32], strides = [1, 1]} : vector<2x128xf32> to vector<2x32xf32>
    %241 = math.tanh %240 : vector<2x32xf32>
    %c256 = arith.constant 256 : index
    %c0_62 = arith.constant 0 : index
    %242 = vector.load %arg2[%c256, %c0_62] : memref<288x128xf32, #tpu.memory_space<vmem>>, vector<32x128xf32>
    %cst_63 = arith.constant dense<0.000000e+00> : vector<2x128xf32>
    %243 = tpu.matmul %241, %242, %cst_63 {dimension_numbers = #tpu.dot_dimension_numbers<[1], [0], [0], [1], [0, 0, 1, 1], [], []>} : vector<2x32xf32>, vector<32x128xf32>, vector<2x128xf32> -> vector<2x128xf32>
    %c13 = arith.constant 13 : index
    %c0_64 = arith.constant 0 : index
    %244 = vector.load %arg3[%c13, %c0_64] : memref<16x128xf32, #tpu.memory_space<vmem>>, vector<1x128xf32>
    %245 = vector.broadcast %244 : vector<1x128xf32> to vector<2x128xf32>
    %246 = arith.addf %243, %245 : vector<2x128xf32>
    %c0_65 = arith.constant 0 : index
    %c0_66 = arith.constant 0 : index
    %247 = vector.load %arg5[%c0_65, %c0_66] : memref<2x128xf32, #tpu.memory_space<vmem>>, vector<2x128xf32>
    tpu.vector_store %arg5[%c0_65, %c0_66], %246 {strides = array<i32>} : memref<2x128xf32, #tpu.memory_space<vmem>>, vector<2x128xf32>,
    return
  }
}

</mosaic_0001>

<bundles_post_ra>
// kernel: tpu_custom_call.1
= control target key start
LH: loop header
LB: loop body
LE: loop exit
PB: predicated region body
PF: predicated region fallthrough
CT: control target
= control target key end

     0   :  { %11 = vsyncpa [#allocation3], 0  ;;  %s3356_s0 = inlined_call_operand.hbm [shape: f32[16,32], index: 0, kind: input, shape index: {}]   ;;  %s3357_s1 = inlined_call_operand.hbm [shape: f32[8,1,8], index: 1, kind: input, shape index: {}]   ;;  %s3358_s2 = inlined_call_operand.hbm [shape: f32[288,128], index: 2, kind: input, shape index: {}]   ;;  %s3359_s3 = inlined_call_operand.hbm [shape: f32[16,128], index: 3, kind: input, shape index: {}]   ;;  %s3360_s4 = inlined_call_operand.hbm [shape: f32[16,128], index: 4, kind: output, shape index: {0}]   ;;  %s3361_s5 = inlined_call_operand.hbm [shape: f32[2,128], index: 5, kind: output, shape index: {1}]  }
   0x1   :  { %12 = vsyncpa [#allocation6], 0 }
   0x2   :  { %13 = vsyncpa [#allocation9], 0 }
   0x3   :  { %14 = vsyncpa [#allocation4], 0 }
   0x4   :  { %15 = vsyncpa [#allocation12], 0  ;;  %s3014_s18 = smov [#allocation5]   ;;  %s2872_s22 = scalar_lea.hbm %s3357_s1, 128 }
   0x5   :  { %s33_s19 = sshll.u32 %s3014_s18, 4  ;;  %p2873_p0 = scmp.ne.s32.totalorder %s3357_s1, %s2872_s22  ;;  %s34_s19 = int_to_ptr.vmem [resolvable:$true] %s33_s19 }
   0x6   :  { %p2876_p1 = scmp.lt.u32.totalorder %s2872_s22, %s3357_s1 }
   0x8   :  { %p2878_p2 = pnand %p2876_p1, %p2873_p0 }
   0xa   :  { %2881 = shalt.err (!%p2878_p2)
}
   0xb   :  { %s2882_s27 = scalar_lea.vmem %s34_s19, 128  ;;  %p2887_p4 = scmp.lt.s32.totalorder %s34_s19, %s34_s19 }
   0xc   :  { %p2883_p3 = scmp.ne.s32.totalorder %s34_s19, %s2882_s27  ;;  %p2888_p5 = scmp.lt.s32.totalorder %s2882_s27, %s2882_s27 }
   0xe   :  { %p2889_p6 = por %p2888_p5, %p2887_p4 }
  0x10   :  { %p2890_p7 = pnand %p2889_p6, %p2883_p3 }
  0x12   :  { %2893 = shalt.err (!%p2890_p7)
}
  0x13   :  { %s3015_s28 = smov 16   ;;  %s3016_s29 = smov 1  }
  0x14   :  { %39 = dma.hbm_to_vmem [thread:$0]  %s3357_s1, 128, %s34_s19, [#allocation6], %s3015_s28, %s3015_s28, %s3016_s29  }
  0x15   :  { %s3017_s7 = smov [#allocation2]   ;;  %s2894_s11 = scalar_lea.hbm %s3356_s0, 256 }
  0x16   :  { %s21_s8 = sshll.u32 %s3017_s7, 4  ;;  %p2895_p8 = scmp.ne.s32.totalorder %s3356_s0, %s2894_s11  ;;  %s22_s8 = int_to_ptr.vmem [resolvable:$true] %s21_s8 }
  0x17   :  { %p2898_p9 = scmp.lt.u32.totalorder %s2894_s11, %s3356_s0 }
  0x19   :  { %p2900_p10 = pnand %p2898_p9, %p2895_p8 }
  0x1b   :  { %2903 = shalt.err (!%p2900_p10)
}
  0x1c   :  { %s2904_s16 = scalar_lea.vmem %s22_s8, 256  ;;  %p2909_p12 = scmp.lt.s32.totalorder %s22_s8, %s22_s8 }
  0x1d   :  { %p2905_p11 = scmp.ne.s32.totalorder %s22_s8, %s2904_s16  ;;  %p2910_p13 = scmp.lt.s32.totalorder %s2904_s16, %s2904_s16 }
  0x1f   :  { %p2911_p0 = por %p2910_p13, %p2909_p12 }
  0x21   :  { %p2912_p1 = pnand %p2911_p0, %p2905_p11 }
  0x23   :  { %2915 = shalt.err (!%p2912_p1)
}
  0x24   :  { %s3018_s1 = smov 128   ;;  %s3019_s17 = smov 8  }
  0x25   :  { %27 = dma.hbm_to_vmem [thread:$0]  %s3356_s0, 256, %s22_s8, [#allocation3], %s3018_s1, %s3018_s1, %s3019_s17  }
  0x26   :  { %s3020_s20 = smov [#allocation7]   ;;  %s3021_s22 = smov [#allocation8]  }
  0x27   :  { %s45_s21 = sshll.u32 %s3020_s20, 4  ;;  %s57_s23 = sshll.u32 %s3021_s22, 4  ;;  %s46_s21 = int_to_ptr.vmem [resolvable:$true] %s45_s21  ;;  %s3092_s23 = int_to_ptr.vmem [resolvable:$true] %s57_s23 }
  0x28   :  { %s2916_s26 = scalar_lea.hbm %s3358_s2, 4608 }
  0x29   :  { %p2917_p2 = scmp.ne.s32.totalorder %s3358_s2, %s2916_s26  ;;  %p2920_p3 = scmp.lt.u32.totalorder %s2916_s26, %s3358_s2 }
  0x2b   :  { %p2922_p4 = pnand %p2920_p3, %p2917_p2 }
  0x2d   :  { %2925 = shalt.err (!%p2922_p4)
}
  0x2e   :  { %s2926_s0 = scalar_lea.vmem %s46_s21, 4608  ;;  %p2931_p6 = scmp.lt.s32.totalorder %s46_s21, %s46_s21 }
  0x2f   :  { %p2927_p5 = scmp.ne.s32.totalorder %s46_s21, %s2926_s0  ;;  %p2932_p7 = scmp.lt.s32.totalorder %s2926_s0, %s2926_s0 }
  0x31   :  { %p2933_p8 = por %p2932_p7, %p2931_p6 }
  0x33   :  { %p2934_p9 = pnand %p2933_p8, %p2927_p5 }
  0x35   :  { %2937 = shalt.err (!%p2934_p9)
}
  0x36   :  { %51 = dma.hbm_to_vmem [thread:$0]  %s3358_s2, 4608, %s46_s21, [#allocation6], %s3018_s1, %s3018_s1, %s3019_s17  }
  0x37   :  { %s2938_s11 = scalar_lea.hbm %s3359_s3, 256 }
  0x38   :  { %p2939_p10 = scmp.ne.s32.totalorder %s3359_s3, %s2938_s11  ;;  %p2942_p11 = scmp.lt.u32.totalorder %s2938_s11, %s3359_s3 }
  0x3a   :  { %p2944_p12 = pnand %p2942_p11, %p2939_p10 }
  0x3c   :  { %2947 = shalt.err (!%p2944_p12)
}
  0x3d   :  { %s2948_s16 = scalar_lea.vmem %s3092_s23, 256  ;;  %p2953_p0 = scmp.lt.s32.totalorder %s3092_s23, %s3092_s23 }
  0x3e   :  { %p2949_p13 = scmp.ne.s32.totalorder %s3092_s23, %s2948_s16  ;;  %p2954_p1 = scmp.lt.s32.totalorder %s2948_s16, %s2948_s16 }
  0x40   :  { %p2955_p2 = por %p2954_p1, %p2953_p0 }
  0x42   :  { %p2956_p3 = pnand %p2955_p2, %p2949_p13 }
  0x44   :  { %2959 = shalt.err (!%p2956_p3)
}
  0x45   :  { %63 = dma.hbm_to_vmem [thread:$0]  %s3359_s3, 256, %s3092_s23, [#allocation9], %s3018_s1, %s3018_s1, %s3019_s17  }
  0x46   :  { %3004 = dma.done.wait [#allocation3], 256  }
  0x47   :  { %3005 = vsyncadd [#allocation3], 4294967040 }
  0x48   :  { %3006 = dma.done.wait [#allocation6], 4736  }
  0x49   :  { %3007 = vsyncadd [#allocation6], 4294962560 }
  0x4a   :  { %3008 = dma.done.wait [#allocation9], 256  }
  0x4b   :  { %3009 = vsyncadd [#allocation9], 4294967040  ;;  %vm80_vm0 = vcmask 261120   ;;  %v76_v0 = vld [vmem:[#allocation2] sm:$0xff]  ;;  %v77_v1 = vld [vmem:[#allocation2 + $0x8] sm:$0xff]  ;;  %v3022_v36 = vmov 0.0  }
  0x4c   :  { %v81_v2 = vsel %vm80_vm0, %v76_v0, 0.0  ;;  %v84_v3 = vsel %vm80_vm0, %v77_v1, 0.0  ;;  %v120_v14 = vld [vmem:[#allocation7] sm:$0xff]  ;;  %v121_v15 = vld [vmem:[#allocation7 + $0x8] sm:$0xff]  ;;  %v122_v16 = vld [vmem:[#allocation7 + $0x10] sm:$0xff]  ;;  %2566 = vmatprep.subr.mxu1 %v3022_v36  ;;  %vm3023_vm1 = vmmov 0  }
  0x4d   :  { %82 = vadd.xlane.f32.xlu0 %v81_v2  ;;  %v2731_v17 = vpack.c.bf16 %v121_v15, %v120_v14  ;;  %v123_v18 = vld [vmem:[#allocation7 + $0x18] sm:$0xff]  ;;  %v2413_v27 = vld [vmem:[#allocation8] ss:$0 sm:$0xff]  ;;  %v2414_v29 = vld [vmem:[#allocation8 + $0x1] ss:$0 sm:$0xff]  ;;  %2568 = vmatprep.mubr.msk.f32.mxu1 %vm3023_vm1, %v3022_v36  ;;  %s3024_s3 = smov 112  }
  0x4e   :  { %v2735_v19 = vpack.c.bf16 %v123_v18, %v122_v16  ;;  %v2415_v37 = vld [vmem:[#allocation8 + $0x2] ss:$0 sm:$0xff]  ;;  %s3025_s19 = smov 120   ;;  %s3026_s20 = smov 104   ;;  %vm226_vm2 = vcmask 64512   ;;  %vm1614_vm3 = vcmask 130048  }
  0x4f   :  { %2732 = vmatprep.subr.bf16.mxu0 %v2731_v17  ;;  %s3027_s21 = smov 96   ;;  %v2434_v57 = vld [vmem:[#allocation5] ss:$0 sm:$0xff]  ;;  %v2438_v18 = vld [vmem:[#allocation5 + $0x4] ss:$0 sm:$0xff]  ;;  %s3028_s22 = smov 64  }
  0x50   :  { %2734 = vmatpush3.bf16.msra.mxu0 %v2731_v17  ;;  %s3029_s23 = smov 24   ;;  %vm1616_vm4 = vcmask 195584   ;;  %vm1886_vm5 = vcmask 523264   ;;  %vm2212_vm6 = vcmask 1040384  }
  0x51   :  { %85 = vadd.xlane.f32.xlu0 %v84_v3  ;;  %2736 = vmatprep.subr.bf16.mxu0 %v2735_v19 }
  0x54   :  { %2738 = vmatpush3.bf16.msra.mxu0 %v2735_v19 }
  0x55   :  { %2576 = vmatprep.subr.mxu0 %v3022_v36 }
  0xda   :  { %v83_v4 = vpop.xlane.xlu0 %82 }
  0xdb   :  { %v88_v5 = vmul.f32 0.03125, %v83_v4 }
  0xdd   :  { %v90_v6 = vsub.f32 %v76_v0, %v88_v5  ;;  %v2435_v0 = vld [vmem:[#allocation5 + $0x1] ss:$0 sm:$0xff] }
  0xde   :  { %v86_v7 = vpop.xlane.xlu0 %85 }
  0xdf   :  { %v89_v8 = vmul.f32 0.03125, %v86_v7  ;;  %v92_v9 = vmul.f32 %v90_v6, %v90_v6 }
  0xe1   :  { %v91_v10 = vsub.f32 %v77_v1, %v89_v8  ;;  %v94_v11 = vsel %vm80_vm0, %v92_v9, 0.0  ;;  %v2436_v1 = vld [vmem:[#allocation5 + $0x2] ss:$0 sm:$0xff] }
  0xe2   :  { %95 = vadd.xlane.f32.xlu1 %v94_v11 }
  0xe3   :  { %v93_v12 = vmul.f32 %v91_v10, %v91_v10 }
  0xe5   :  { %v97_v13 = vsel %vm80_vm0, %v93_v12, 0.0 }
  0xe6   :  { %98 = vadd.xlane.f32.xlu1 %v97_v13 }
 0x16f   :  { %v96_v20 = vpop.xlane.xlu1 %95 }
 0x170   :  { %v100_v21 = vmul.f32 0.03125, %v96_v20 }
 0x172   :  { %v102_v22 = vadd.f32 1e-12, %v100_v21  ;;  %v2439_v21 = vld [vmem:[#allocation5 + $0x5] ss:$0 sm:$0xff] }
 0x173   :  { %v99_v23 = vpop.xlane.xlu1 %98 }
 0x174   :  { %2818 = vrsqrt.f32 %v102_v22  ;;  %v101_v24 = vmul.f32 0.03125, %v99_v23 }
 0x176   :  { %v103_v25 = vadd.f32 1e-12, %v101_v24 }
 0x178   :  { %2820 = vrsqrt.f32 %v103_v25 }
 0x17e   :  { %v2819_v26 = vpop.eup %2818 }
 0x17f   :  { %v106_v28 = vmul.f32 %v2819_v26, %v90_v6 }
 0x181   :  { %v112_v30 = vmul.f32 %v2413_v27, %v106_v28 }
 0x182   :  { %v2821_v31 = vpop.eup %2820 }
 0x183   :  { %v107_v32 = vmul.f32 %v2821_v31, %v91_v10  ;;  %v3133_v33 = vadd.f32 %v2414_v29, %v112_v30  ;;  %v2437_v10 = vld [vmem:[#allocation5 + $0x3] ss:$0 sm:$0xff]  ;;  %v2441_v31 = vld [vmem:[#allocation5 + $0x7] ss:$0 sm:$0xff] }
 0x185   :  { %v113_v34 = vmul.f32 %v2413_v27, %v107_v32  ;;  %2563 = vmatprep.mubr.msk.f32.mxu0 %vm80_vm0, %v3133_v33 }
 0x187   :  { %v3137_v35 = vadd.f32 %v2414_v29, %v113_v34  ;;  %v2440_v29 = vld [vmem:[#allocation5 + $0x6] ss:$0 sm:$0xff] }
 0x189   :  { %2564 = vmatmul.mubr.msk.f32.vlgmr.msra.gmra.mrb[0].mxu0 %vm80_vm0, %v3137_v35 }
 0x18a   :  { %2578 = vmatprep.mubr.msk.f32.mxu0 %vm3023_vm1, %v3022_v36 }
 0x25c   :  { %v2565_v38 = vpop.f32.mrb[0].mxu0 }
 0x25d   :  { %v201_v39 = vpop.f32.mrb[1].mxu0  ;;  %v3151_v41 = vadd.f32 %v2565_v38, %v2415_v37 }
 0x25e   :  { %v3147_v40 = vadd.f32 %v2415_v37, %v201_v39 }
 0x260   :  { %213 = vrot.lane.b32.xlu1 %v3147_v40, %s3024_s3  ;;  %211 = vrot.lane.b32.xlu0 %v3147_v40, %s3025_s19 }
 0x264   :  { %215 = vrot.lane.b32.xlu1 %v3147_v40, %s3026_s20  ;;  %220 = vrot.lane.b32.xlu0 %v3151_v41, %s3024_s3 }
 0x268   :  { %218 = vrot.lane.b32.xlu1 %v3151_v41, %s3025_s19  ;;  %224 = vrot.lane.b32.xlu0 %v3147_v40, %s3027_s21 }
 0x26c   :  { %222 = vrot.lane.b32.xlu1 %v3151_v41, %s3026_s20 }
 0x2d2   :  { %v3158_v42 = vpop.permute.xlu1 %213  ;;  %v3160_v43 = vpop.permute.xlu0 %211 }
 0x2d3   :  { %377 = vrot.lane.b32.xlu0 %v3158_v42, %s3027_s21  ;;  %301 = vrot.lane.b32.xlu1 %v3160_v43, %s3027_s21 }
 0x2d6   :  { %v3164_v44 = vpop.permute.xlu1 %215  ;;  %v3166_v45 = vpop.permute.xlu0 %220 }
 0x2d7   :  { %529 = vrot.lane.b32.xlu0 %v3151_v41, %s3027_s21  ;;  %453 = vrot.lane.b32.xlu1 %v3164_v44, %s3027_s21 }
 0x2da   :  { %v3170_v46 = vpop.permute.xlu1 %218  ;;  %v225_v47 = vpop.permute.xlu0 %224 }
 0x2db   :  { %605 = vrot.lane.b32.xlu1 %v3170_v46, %s3027_s21  ;;  %681 = vrot.lane.b32.xlu0 %v3166_v45, %s3027_s21 }
 0x2dc   :  { %2567 = vmatpush3.xpose.msk.msra.mxu1 %vm226_vm2, %v225_v47 }
 0x2dd   :  { %2571 = vmatprep.subr.mxu1 %v3022_v36 }
 0x2de   :  { %v3176_v48 = vpop.permute.xlu1 %222 }
 0x2df   :  { %2569 = vmatmul.mubr.msk.f32.vlgmr.msra.gmra.mrb[0].mxu1 %vm226_vm2, %v3147_v40  ;;  %757 = vrot.lane.b32.xlu1 %v3176_v48, %s3027_s21 }
 0x2e0   :  { %2573 = vmatprep.mubr.msk.f32.mxu1 %vm3023_vm1, %v3022_v36 }
 0x345   :  { %v302_v49 = vpop.permute.xlu1 %301  ;;  %v378_v50 = vpop.permute.xlu0 %377 }
 0x346   :  { %2572 = vmatpush3.xpose.msk.msra.mxu1 %vm226_vm2, %v302_v49  ;;  %2577 = vmatpush3.xpose.msk.msra.mxu0 %vm226_vm2, %v378_v50 }
 0x347   :  { %2581 = vmatprep.subr.mxu1 %v3022_v36  ;;  %2586 = vmatprep.subr.mxu0 %v3022_v36 }
 0x349   :  { %v454_v51 = vpop.permute.xlu1 %453  ;;  %2574 = vmatmul.mubr.msk.f32.vlgmr.msra.gmra.mrb[2].mxu1 %vm226_vm2, %v3160_v43  ;;  %2579 = vmatmul.mubr.msk.f32.vlgmr.msra.gmra.mrb[2].mxu0 %vm226_vm2, %v3158_v42  ;;  %v530_v52 = vpop.permute.xlu0 %529 }
 0x34a   :  { %2582 = vmatpush3.xpose.msk.msra.mxu1 %vm226_vm2, %v454_v51  ;;  %2587 = vmatpush3.xpose.msk.msra.mxu0 %vm226_vm2, %v530_v52 }
 0x34b   :  { %2583 = vmatprep.mubr.msk.f32.mxu1 %vm3023_vm1, %v3022_v36  ;;  %2588 = vmatprep.mubr.msk.f32.mxu0 %vm3023_vm1, %v3022_v36 }
 0x34c   :  { %2591 = vmatprep.subr.mxu1 %v3022_v36  ;;  %2596 = vmatprep.subr.mxu0 %v3022_v36 }
 0x34d   :  { %v606_v53 = vpop.permute.xlu1 %605  ;;  %2584 = vmatmul.mubr.msk.f32.vlgmr.msra.gmra.mrb[4].mxu1 %vm226_vm2, %v3164_v44  ;;  %2589 = vmatmul.mubr.msk.f32.vlgmr.msra.gmra.mrb[4].mxu0 %vm226_vm2, %v3151_v41  ;;  %v682_v54 = vpop.permute.xlu0 %681 }
 0x34e   :  { %2592 = vmatpush3.xpose.msk.msra.mxu1 %vm226_vm2, %v606_v53  ;;  %2597 = vmatpush3.xpose.msk.msra.mxu0 %vm226_vm2, %v682_v54 }
 0x34f   :  { %2593 = vmatprep.mubr.msk.f32.mxu1 %vm3023_vm1, %v3022_v36  ;;  %2598 = vmatprep.mubr.msk.f32.mxu0 %vm3023_vm1, %v3022_v36 }
 0x350   :  { %2601 = vmatprep.subr.mxu1 %v3022_v36  ;;  %2606 = vmatprep.subr.mxu0 %v3022_v36 }
 0x351   :  { %v758_v55 = vpop.permute.xlu1 %757  ;;  %2594 = vmatmul.mubr.msk.f32.vlgmr.msra.gmra.mrb[6].mxu1 %vm226_vm2, %v3170_v46  ;;  %2599 = vmatmul.mubr.msk.f32.vlgmr.msra.gmra.mrb[6].mxu0 %vm226_vm2, %v3166_v45 }
 0x352   :  { %2602 = vmatpush3.xpose.msk.msra.mxu1 %vm226_vm2, %v758_v55  ;;  %2603 = vmatprep.mubr.msk.f32.mxu1 %vm3023_vm1, %v3022_v36 }
 0x353   :  { %2611 = vmatprep.subr.mxu1 %v3022_v36  ;;  %2608 = vmatprep.mubr.msk.f32.mxu0 %vm3023_vm1, %v3022_v36 }
 0x355   :  { %2604 = vmatmul.mubr.msk.f32.vlgmr.msra.gmra.mrb[8].mxu1 %vm226_vm2, %v3176_v48 }
 0x356   :  { %2613 = vmatprep.mubr.msk.f32.mxu1 %vm3023_vm1, %v3022_v36 }
 0x3b2   :  { %v297_v56 = vpop.f32.mrb[0].mxu1 }
 0x3b3   :  { %v833_v58 = vmul.f32 0.35355338, %v297_v56  ;;  %v2570_v59 = vpop.f32.mrb[1].mxu1 }
 0x3b5   :  { %v897_v60 = vadd.f32 %v2434_v57, %v833_v58 }
 0x3b7   :  { %v905_v61 = vsel %vm226_vm2, %v897_v60, -inf }
 0x3b8   :  { %906 = vmax.xlane.f32.xlu0 %v905_v61 }
 0x41c   :  { %v373_v62 = vpop.f32.mrb[2].mxu1  ;;  %v449_v63 = vpop.f32.mrb[2].mxu0 }
 0x41d   :  { %v834_v2 = vmul.f32 0.35355338, %v373_v62  ;;  %v835_v3 = vmul.f32 0.35355338, %v449_v63  ;;  %v2575_v4 = vpop.f32.mrb[3].mxu1  ;;  %v2580_v5 = vpop.f32.mrb[3].mxu0 }
 0x41f   :  { %v898_v6 = vadd.f32 %v2435_v0, %v834_v2  ;;  %v899_v7 = vadd.f32 %v2436_v1, %v835_v3 }
 0x420   :  { %v525_v8 = vpop.f32.mrb[4].mxu1  ;;  %v601_v9 = vpop.f32.mrb[4].mxu0 }
 0x421   :  { %v836_v11 = vmul.f32 0.35355338, %v525_v8  ;;  %v2585_v12 = vpop.f32.mrb[5].mxu1  ;;  %v2590_v13 = vpop.f32.mrb[5].mxu0  ;;  %v837_v14 = vmul.f32 0.35355338, %v601_v9 }
 0x422   :  { %v908_v15 = vsel %vm226_vm2, %v898_v6, -inf  ;;  %v911_v16 = vsel %vm226_vm2, %v899_v7, -inf }
 0x423   :  { %909 = vmax.xlane.f32.xlu1 %v908_v15  ;;  %912 = vmax.xlane.f32.xlu0 %v911_v16  ;;  %v900_v17 = vadd.f32 %v2437_v10, %v836_v11  ;;  %v901_v27 = vadd.f32 %v2438_v18, %v837_v14 }
 0x424   :  { %v677_v19 = vpop.f32.mrb[6].mxu1  ;;  %v753_v20 = vpop.f32.mrb[6].mxu0 }
 0x425   :  { %v838_v22 = vmul.f32 0.35355338, %v677_v19  ;;  %v2595_v23 = vpop.f32.mrb[7].mxu1  ;;  %v2600_v24 = vpop.f32.mrb[7].mxu0  ;;  %v839_v25 = vmul.f32 0.35355338, %v753_v20 }
 0x426   :  { %v914_v26 = vsel %vm226_vm2, %v900_v17, -inf  ;;  %v917_v38 = vsel %vm226_vm2, %v901_v27, -inf }
 0x427   :  { %915 = vmax.xlane.f32.xlu0 %v914_v26  ;;  %v902_v28 = vadd.f32 %v2439_v21, %v838_v22  ;;  %v903_v39 = vadd.f32 %v2440_v29, %v839_v25 }
 0x428   :  { %v829_v30 = vpop.f32.mrb[8].mxu1 }
 0x429   :  { %v840_v32 = vmul.f32 0.35355338, %v829_v30  ;;  %v2605_v34 = vpop.f32.mrb[9].mxu1  ;;  %v920_v37 = vsel %vm226_vm2, %v902_v28, -inf  ;;  %v923_v50 = vsel %vm226_vm2, %v903_v39, -inf }
 0x42a   :  { %921 = vmax.xlane.f32.xlu1 %v920_v37 }
 0x42b   :  { %918 = vmax.xlane.f32.xlu0 %v917_v38  ;;  %v904_v47 = vadd.f32 %v2441_v31, %v840_v32 }
 0x42d   :  { %v926_v49 = vsel %vm226_vm2, %v904_v47, -inf }
 0x42e   :  { %927 = vmax.xlane.f32.xlu1 %v926_v49 }
 0x42f   :  { %924 = vmax.xlane.f32.xlu0 %v923_v50 }
 0x43f   :  { %1069 = vrot.lane.b32.xlu1 %v3160_v43, %s3028_s22 }
 0x443   :  { %1145 = vrot.lane.b32.xlu1 %v3158_v42, %s3028_s22 }
 0x445   :  { %993 = vrot.lane.b32.xlu0 %v3147_v40, %s3028_s22  ;;  %v907_v51 = vpop.xlane.xlu0 %906 }
 0x446   :  { %v929_v52 = vsub.f32 %v897_v60, %v907_v51 }
 0x447   :  { %1221 = vrot.lane.b32.xlu1 %v3164_v44, %s3028_s22 }
 0x448   :  { %v937_v53 = vmul.f32 1.442695, %v929_v52 }
 0x449   :  { %1297 = vrot.lane.b32.xlu0 %v3151_v41, %s3028_s22 }
 0x44a   :  { %2822 = vpow2.f32 %v937_v53 }
 0x44b   :  { %1373 = vrot.lane.b32.xlu1 %v3170_v46, %s3028_s22 }
 0x454   :  { %v3245_v43 = vpop.eup %2822 }
 0x455   :  { %v953_v42 = vsel %vm226_vm2, %v3245_v43, 0.0 }
 0x468   :  { %954 = vadd.xlane.f32.xlu0 %v953_v42 }
 0x4b0   :  { %v910_v40 = vpop.xlane.xlu1 %909  ;;  %v913_v54 = vpop.xlane.xlu0 %912 }
 0x4b1   :  { %v930_v55 = vsub.f32 %v898_v6, %v910_v40  ;;  %v931_v44 = vsub.f32 %v899_v7, %v913_v54 }
 0x4b3   :  { %v939_v56 = vmul.f32 1.442695, %v930_v55  ;;  %v941_v57 = vmul.f32 1.442695, %v931_v44 }
 0x4b4   :  { %v916_v41 = vpop.xlane.xlu0 %915 }
 0x4b5   :  { %2824 = vpow2.f32 %v939_v56  ;;  %v932_v58 = vsub.f32 %v900_v17, %v916_v41 }
 0x4b6   :  { %2826 = vpow2.f32 %v941_v57 }
 0x4b7   :  { %v943_v46 = vmul.f32 1.442695, %v932_v58  ;;  %v922_v59 = vpop.xlane.xlu1 %921 }
 0x4b8   :  { %v934_v60 = vsub.f32 %v902_v28, %v922_v59  ;;  %v919_v61 = vpop.xlane.xlu0 %918  ;;  %v1634_v59 = vld [vmem:[#allocation7 + $0x28] sm:$0xff] }
 0x4b9   :  { %2828 = vpow2.f32 %v943_v46  ;;  %v933_v62 = vsub.f32 %v901_v27, %v919_v61  ;;  %v1633_v46 = vld [vmem:[#allocation7 + $0x20] sm:$0xff]  ;;  %v1635_v61 = vld [vmem:[#allocation7 + $0x30] sm:$0xff] }
 0x4ba   :  { %v947_v63 = vmul.f32 1.442695, %v934_v60  ;;  %v2739_v60 = vpack.c.bf16 %v1634_v59, %v1633_v46  ;;  %v2453_v59 = vld [vmem:[#allocation8 + $0x4] ss:$0 sm:$0xff] }
 0x4bb   :  { %v945_v0 = vmul.f32 1.442695, %v933_v62  ;;  %v928_v1 = vpop.xlane.xlu1 %927  ;;  %v1636_v62 = vld [vmem:[#allocation7 + $0x38] sm:$0xff] }
 0x4bc   :  { %2830 = vpow2.f32 %v947_v63  ;;  %v936_v2 = vsub.f32 %v904_v47, %v928_v1  ;;  %v925_v3 = vpop.xlane.xlu0 %924  ;;  %v2743_v63 = vpack.c.bf16 %v1636_v62, %v1635_v61  ;;  %v2454_v61 = vld [vmem:[#allocation8 + $0x5] ss:$0 sm:$0xff] }
 0x4bd   :  { %2832 = vpow2.f32 %v945_v0  ;;  %v935_v4 = vsub.f32 %v903_v39, %v925_v3 }
 0x4be   :  { %v951_v5 = vmul.f32 1.442695, %v936_v2 }
 0x4bf   :  { %v2825_v6 = vpop.eup %2824  ;;  %v949_v7 = vmul.f32 1.442695, %v935_v4  ;;  %v1070_v8 = vpop.permute.xlu1 %1069 }
 0x4c0   :  { %v2827_v9 = vpop.eup %2826  ;;  %2834 = vpow2.f32 %v951_v5  ;;  %v994_v10 = vpop.permute.xlu0 %993  ;;  %v956_v11 = vsel %vm226_vm2, %v2825_v6, 0.0  ;;  %2612 = vmatpush3.msra.mxu1 %v1070_v8 }
 0x4c1   :  { %2836 = vpow2.f32 %v949_v7  ;;  %957 = vadd.xlane.f32.xlu1 %v956_v11  ;;  %v959_v12 = vsel %vm226_vm2, %v2827_v9, 0.0  ;;  %2607 = vmatpush3.msra.mxu0 %v994_v10 }
 0x4c2   :  { %960 = vadd.xlane.f32.xlu0 %v959_v12  ;;  %2616 = vmatprep.subr.mxu0 %v3022_v36 }
 0x4c3   :  { %v2829_v13 = vpop.eup %2828  ;;  %2621 = vmatprep.subr.mxu1 %v3022_v36  ;;  %v1146_v27 = vpop.permute.xlu1 %1145 }
 0x4c4   :  { %v962_v14 = vsel %vm226_vm2, %v2829_v13, 0.0  ;;  %v1298_v23 = vpop.permute.xlu0 %1297 }
 0x4c5   :  { %963 = vadd.xlane.f32.xlu1 %v962_v14 }
 0x4c6   :  { %v2831_v15 = vpop.eup %2830 }
 0x4c7   :  { %v2833_v16 = vpop.eup %2832  ;;  %v968_v17 = vsel %vm226_vm2, %v2831_v15, 0.0  ;;  %v1222_v28 = vpop.permute.xlu1 %1221 }
 0x4c8   :  { %v965_v18 = vsel %vm226_vm2, %v2833_v16, 0.0 }
 0x4c9   :  { %969 = vadd.xlane.f32.xlu1 %v968_v17  ;;  %966 = vadd.xlane.f32.xlu0 %v965_v18 }
 0x4ca   :  { %v3256_v19 = vpop.eup %2834 }
 0x4cb   :  { %v3258_v20 = vpop.eup %2836  ;;  %v974_v21 = vsel %vm226_vm2, %v3256_v19, 0.0 }
 0x4cc   :  { %v971_v22 = vsel %vm226_vm2, %v3258_v20, 0.0 }
 0x4cd   :  { %975 = vadd.xlane.f32.xlu1 %v974_v21  ;;  %972 = vadd.xlane.f32.xlu0 %v971_v22 }
 0x4de   :  { %1525 = vrot.lane.b32.xlu1 %v3176_v48, %s3028_s22  ;;  %v1374_v48 = vpop.permute.xlu1 %1373 }
 0x4e3   :  { %1449 = vrot.lane.b32.xlu0 %v3166_v45, %s3028_s22 }
 0x4f5   :  { %v955_v24 = vpop.xlane.xlu0 %954 }
 0x4f6   :  { %2838 = vrcp.f32 %v955_v24 }
 0x500   :  { %v2839_v25 = vpop.eup %2838 }
 0x501   :  { %v985_v26 = vmul.f32 %v2839_v25, %v3245_v43 }
 0x503   :  { %2609 = vmatmul.mubr.msk.f32.vlgmr.msra.gmra.mrb[8].mxu0 %vm226_vm2, %v985_v26  ;;  %v2450_v26 = vld [vmem:[#allocation8 + $0x3] ss:$0 sm:$0xff] }
 0x504   :  { %2617 = vmatpush3.msra.mxu0 %v1146_v27  ;;  %2618 = vmatprep.mubr.msk.f32.mxu0 %vm3023_vm1, %v3022_v36 }
 0x505   :  { %2626 = vmatprep.subr.mxu0 %v3022_v36 }
 0x54e   :  { %v958_v29 = vpop.xlane.xlu1 %957 }
 0x54f   :  { %2840 = vrcp.f32 %v958_v29  ;;  %v961_v45 = vpop.xlane.xlu0 %960 }
 0x550   :  { %2842 = vrcp.f32 %v961_v45 }
 0x552   :  { %v964_v30 = vpop.xlane.xlu1 %963 }
 0x553   :  { %2844 = vrcp.f32 %v964_v30 }
 0x556   :  { %v970_v31 = vpop.xlane.xlu1 %969  ;;  %v967_v32 = vpop.xlane.xlu0 %966 }
 0x557   :  { %2846 = vrcp.f32 %v970_v31 }
 0x558   :  { %2848 = vrcp.f32 %v967_v32 }
 0x559   :  { %v2841_v34 = vpop.eup %2840 }
 0x55a   :  { %v2843_v37 = vpop.eup %2842  ;;  %v986_v38 = vmul.f32 %v2841_v34, %v2825_v6  ;;  %v976_v39 = vpop.xlane.xlu1 %975 }
 0x55b   :  { %v973_v47 = vpop.xlane.xlu0 %972  ;;  %v987_v49 = vmul.f32 %v2843_v37, %v2827_v9  ;;  %2850 = vrcp.f32 %v976_v39 }
 0x55c   :  { %2852 = vrcp.f32 %v973_v47  ;;  %2614 = vmatmul.mubr.msk.f32.vlgmr.msra.gmra.mrb[10].mxu1 %vm226_vm2, %v986_v38 }
 0x55d   :  { %v2845_v50 = vpop.eup %2844  ;;  %2619 = vmatmul.mubr.msk.f32.vlgmr.msra.gmra.mrb[10].mxu0 %vm226_vm2, %v987_v49  ;;  %2622 = vmatpush3.msra.mxu1 %v1222_v28 }
 0x55e   :  { %v988_v51 = vmul.f32 %v2845_v50, %v2829_v13  ;;  %2627 = vmatpush3.msra.mxu0 %v1298_v23  ;;  %2623 = vmatprep.mubr.msk.f32.mxu1 %vm3023_vm1, %v3022_v36  ;;  %v1526_v40 = vpop.permute.xlu1 %1525 }
 0x55f   :  { %2631 = vmatprep.subr.mxu1 %v3022_v36  ;;  %2628 = vmatprep.mubr.msk.f32.mxu0 %vm3023_vm1, %v3022_v36  ;;  %v1450_v55 = vpop.permute.xlu0 %1449 }
 0x560   :  { %2624 = vmatmul.mubr.msk.f32.vlgmr.msra.gmra.mrb[12].mxu1 %vm226_vm2, %v988_v51  ;;  %2636 = vmatprep.subr.mxu0 %v3022_v36 }
 0x561   :  { %v2847_v52 = vpop.eup %2846  ;;  %2632 = vmatpush3.msra.mxu1 %v1374_v48  ;;  %2633 = vmatprep.mubr.msk.f32.mxu1 %vm3023_vm1, %v3022_v36 }
 0x562   :  { %v2849_v53 = vpop.eup %2848  ;;  %v990_v43 = vmul.f32 %v2847_v52, %v2831_v15  ;;  %2641 = vmatprep.subr.mxu1 %v3022_v36 }
 0x563   :  { %v989_v42 = vmul.f32 %v2849_v53, %v2833_v16  ;;  %v1766_v53 = vld [vmem:[#allocation7 + $0x48] sm:$0xff] }
 0x564   :  { %2634 = vmatmul.mubr.msk.f32.vlgmr.msra.gmra.mrb[14].mxu1 %vm226_vm2, %v990_v43 }
 0x565   :  { %v2851_v54 = vpop.eup %2850  ;;  %2629 = vmatmul.mubr.msk.f32.vlgmr.msra.gmra.mrb[12].mxu0 %vm226_vm2, %v989_v42  ;;  %2642 = vmatpush3.msra.mxu1 %v1526_v40  ;;  %v1767_v42 = vld [vmem:[#allocation7 + $0x50] sm:$0xff]  ;;  %v1768_v40 = vld [vmem:[#allocation7 + $0x58] sm:$0xff] }
 0x566   :  { %v2853_v44 = vpop.eup %2852  ;;  %v992_v56 = vmul.f32 %v2851_v54, %v3256_v19  ;;  %2637 = vmatpush3.msra.mxu0 %v1450_v55  ;;  %2638 = vmatprep.mubr.msk.f32.mxu0 %vm3023_vm1, %v3022_v36  ;;  %v2751_v54 = vpack.c.bf16 %v1768_v40, %v1767_v42 }
 0x567   :  { %v991_v57 = vmul.f32 %v2853_v44, %v3258_v20  ;;  %2643 = vmatprep.mubr.msk.f32.mxu1 %vm3023_vm1, %v3022_v36  ;;  %2740 = vmatprep.subr.bf16.mxu0 %v2739_v60 }
 0x568   :  { %2644 = vmatmul.mubr.msk.f32.vlgmr.msra.gmra.mrb[16].mxu1 %vm226_vm2, %v992_v56 }
 0x569   :  { %2639 = vmatmul.mubr.msk.f32.vlgmr.msra.gmra.mrb[14].mxu0 %vm226_vm2, %v991_v57 }
 0x56a   :  { %2742 = vmatpush3.bf16.msra.mxu0 %v2739_v60 }
 0x56b   :  { %2744 = vmatprep.subr.bf16.mxu0 %v2743_v63 }
 0x56e   :  { %2746 = vmatpush3.bf16.msra.mxu0 %v2743_v63 }
 0x5d6   :  { %v1065_v41 = vpop.f32.mrb[8].mxu0 }
 0x5d7   :  { %v2610_v58 = vpop.f32.mrb[9].mxu0 }
 0x62f   :  { %v1141_v0 = vpop.f32.mrb[10].mxu1 }
 0x630   :  { %v1217_v1 = vpop.f32.mrb[10].mxu0  ;;  %v2615_v2 = vpop.f32.mrb[11].mxu1  ;;  %1602 = vrot.lane.b32.xlu0 %v1141_v0, %s3019_s17 }
 0x631   :  { %1606 = vrot.lane.b32.xlu1 %v1217_v1, %s3015_s28  ;;  %v2620_v3 = vpop.f32.mrb[11].mxu0 }
 0x633   :  { %v1293_v4 = vpop.f32.mrb[12].mxu1 }
 0x634   :  { %v2625_v5 = vpop.f32.mrb[13].mxu1 }
 0x635   :  { %1610 = vrot.lane.b32.xlu1 %v1293_v4, %s3029_s23  ;;  %v1873_v4 = vld [vmem:[#allocation7 + $0x60] sm:$0xff]  ;;  %v1874_v5 = vld [vmem:[#allocation7 + $0x68] sm:$0xff] }
 0x637   :  { %v1445_v6 = vpop.f32.mrb[14].mxu1 }
 0x638   :  { %v1369_v7 = vpop.f32.mrb[12].mxu0  ;;  %v2635_v8 = vpop.f32.mrb[15].mxu1  ;;  %1619 = vrot.lane.b32.xlu0 %v1445_v6, %s3019_s17  ;;  %v2755_v6 = vpack.c.bf16 %v1874_v5, %v1873_v4  ;;  %v2216_v4 = vld [vmem:[#allocation7 + $0xf0] sm:$0xff]  ;;  %v2217_v5 = vld [vmem:[#allocation7 + $0xf8] sm:$0xff] }
 0x639   :  { %v2630_v9 = vpop.f32.mrb[13].mxu0  ;;  %v1876_v8 = vld [vmem:[#allocation7 + $0x78] sm:$0xff] }
 0x63a   :  { %2756 = vmatprep.subr.bf16.mxu0 %v2755_v6 }
 0x63b   :  { %v1597_v10 = vpop.f32.mrb[16].mxu1 }
 0x63c   :  { %v1521_v11 = vpop.f32.mrb[14].mxu0  ;;  %v2645_v12 = vpop.f32.mrb[17].mxu1  ;;  %1627 = vrot.lane.b32.xlu1 %v1597_v10, %s3029_s23  ;;  %v1877_v10 = vld [vmem:[#allocation7 + $0x80] sm:$0xff] }
 0x63d   :  { %1623 = vrot.lane.b32.xlu0 %v1521_v11, %s3015_s28  ;;  %v2640_v13 = vpop.f32.mrb[15].mxu0  ;;  %v1878_v11 = vld [vmem:[#allocation7 + $0x88] sm:$0xff]  ;;  %s3031_s28 = smov [#allocation10]  }
 0x63e   :  { %v2763_v12 = vpack.c.bf16 %v1878_v11, %v1877_v10  ;;  %v1879_v13 = vld [vmem:[#allocation7 + $0x90] sm:$0xff]  ;;  %s2385_s24 = sshll.u32 %s3031_s28, 4  ;;  %s2386_s24 = int_to_ptr.vmem [resolvable:$true] %s2385_s24 }
 0x63f   :  { %s2960_s25 = scalar_lea.vmem %s2386_s24, 256  ;;  %p2965_p5 = scmp.lt.s32.totalorder %s2386_s24, %s2386_s24 }
 0x640   :  { %p2961_p4 = scmp.ne.s32.totalorder %s2386_s24, %s2960_s25  ;;  %p2966_p6 = scmp.lt.s32.totalorder %s2960_s25, %s2960_s25 }
 0x642   :  { %p2967_p7 = por %p2966_p6, %p2965_p5 }
 0x644   :  { %p2968_p8 = pnand %p2967_p7, %p2961_p4 }
 0x6a2   :  { %v1603_v14 = vpop.permute.xlu0 %1602 }
 0x6a3   :  { %v1607_v15 = vpop.permute.xlu1 %1606  ;;  %v1613_v16 = vsel %vm226_vm2, %v1065_v41, %v1603_v14  ;;  %v1880_v14 = vld [vmem:[#allocation7 + $0x98] sm:$0xff] }
 0x6a4   :  { %v1615_v18 = vsel %vm1614_vm3, %v1613_v16, %v1607_v15  ;;  %v2767_v15 = vpack.c.bf16 %v1880_v14, %v1879_v13  ;;  %v2455_v16 = vld [vmem:[#allocation8 + $0x6] ss:$0 sm:$0xff] }
 0x6a7   :  { %v1611_v17 = vpop.permute.xlu1 %1610 }
 0x6a8   :  { %v1617_v19 = vsel %vm1616_vm4, %v1615_v18, %v1611_v17 }
 0x6a9   :  { %2654 = vmatprep.mubr.msk.f32.mxu0 %vm80_vm0, %v1617_v19 }
 0x6aa   :  { %v1620_v20 = vpop.permute.xlu0 %1619 }
 0x6ab   :  { %v1630_v22 = vsel %vm226_vm2, %v1369_v7, %v1620_v20  ;;  %v1875_v7 = vld [vmem:[#allocation7 + $0x70] sm:$0xff] }
 0x6ac   :  { %v2759_v9 = vpack.c.bf16 %v1876_v8, %v1875_v7  ;;  %v2791_v7 = vpack.c.bf16 %v2217_v5, %v2216_v4  ;;  %v2466_v4 = vld [vmem:[#allocation8 + $0xb] ss:$0 sm:$0xff] }
 0x6ae   :  { %v1628_v21 = vpop.permute.xlu1 %1627 }
 0x6af   :  { %v1624_v23 = vpop.permute.xlu0 %1623 }
 0x6b0   :  { %v1631_v24 = vsel %vm1614_vm3, %v1630_v22, %v1624_v23 }
 0x6b1   :  { %v1632_v25 = vsel %vm1616_vm4, %v1631_v24, %v1628_v21 }
 0x6b2   :  { %2655 = vmatmul.mubr.msk.f32.vlgmr.msra.gmra.mrb[16].mxu0 %vm80_vm0, %v1632_v25 }
 0x6b3   :  { %2758 = vmatpush3.bf16.msra.mxu0 %v2755_v6 }
 0x6b4   :  { %2760 = vmatprep.subr.bf16.mxu0 %v2759_v9 }
 0x6b7   :  { %2762 = vmatpush3.bf16.msra.mxu0 %v2759_v9 }
 0x6b8   :  { %2764 = vmatprep.subr.bf16.mxu0 %v2763_v12 }
 0x6bb   :  { %2766 = vmatpush3.bf16.msra.mxu0 %v2763_v12 }
 0x6bc   :  { %2768 = vmatprep.subr.bf16.mxu0 %v2767_v15 }
 0x6bf   :  { %2770 = vmatpush3.bf16.msra.mxu0 %v2767_v15  ;;  %v2461_v15 = vld [vmem:[#allocation8 + $0x8] ss:$0 sm:$0xff] }
 0x785   :  { %v2656_v27 = vpop.f32.mrb[16].mxu0 }
 0x786   :  { %v1720_v28 = vadd.f32 %v2656_v27, %v2450_v26  ;;  %v1714_v48 = vpop.f32.mrb[17].mxu0 }
 0x787   :  { %v1715_v29 = vadd.f32 %v2450_v26, %v1714_v48 }
 0x788   :  { %v1724_v45 = vadd.f32 %v1720_v28, %v3137_v35 }
 0x789   :  { %v1723_v30 = vadd.f32 %v1715_v29, %v3133_v33  ;;  %v1765_v33 = vld [vmem:[#allocation7 + $0x40] sm:$0xff] }
 0x78a   :  { %v1730_v31 = vsel %vm80_vm0, %v1724_v45, 0.0  ;;  %v2747_v43 = vpack.c.bf16 %v1766_v53, %v1765_v33 }
 0x78b   :  { %1731 = vadd.xlane.f32.xlu1 %v1730_v31  ;;  %v1727_v32 = vsel %vm80_vm0, %v1723_v30, 0.0 }
 0x78c   :  { %1728 = vadd.xlane.f32.xlu0 %v1727_v32  ;;  %2748 = vmatprep.subr.bf16.mxu1 %v2747_v43 }
 0x78d   :  { %2750 = vmatpush3.bf16.msra.mxu1 %v2747_v43 }
 0x78e   :  { %2752 = vmatprep.subr.bf16.mxu1 %v2751_v54 }
 0x791   :  { %2754 = vmatpush3.bf16.msra.mxu1 %v2751_v54 }
 0x818   :  { %v1732_v34 = vpop.xlane.xlu1 %1731 }
 0x819   :  { %v1734_v37 = vmul.f32 0.03125, %v1732_v34  ;;  %v1729_v38 = vpop.xlane.xlu0 %1728 }
 0x81a   :  { %v1733_v39 = vmul.f32 0.03125, %v1729_v38 }
 0x81b   :  { %v1736_v47 = vsub.f32 %v1724_v45, %v1734_v37 }
 0x81c   :  { %v1735_v49 = vsub.f32 %v1723_v30, %v1733_v39 }
 0x81d   :  { %v1738_v52 = vmul.f32 %v1736_v47, %v1736_v47 }
 0x81e   :  { %v1737_v50 = vmul.f32 %v1735_v49, %v1735_v49 }
 0x81f   :  { %v1742_v35 = vsel %vm80_vm0, %v1738_v52, 0.0 }
 0x820   :  { %v1739_v51 = vsel %vm80_vm0, %v1737_v50, 0.0 }
 0x821   :  { %1740 = vadd.xlane.f32.xlu0 %v1739_v51 }
 0x825   :  { %1743 = vadd.xlane.f32.xlu0 %v1742_v35 }
 0x8ae   :  { %v1741_v55 = vpop.xlane.xlu0 %1740 }
 0x8af   :  { %v1745_v44 = vmul.f32 0.03125, %v1741_v55 }
 0x8b1   :  { %v1747_v56 = vadd.f32 1e-12, %v1745_v44 }
 0x8b2   :  { %v1744_v57 = vpop.xlane.xlu0 %1743 }
 0x8b3   :  { %2854 = vrsqrt.f32 %v1747_v56  ;;  %v1746_v41 = vmul.f32 0.03125, %v1744_v57 }
 0x8b5   :  { %v1748_v58 = vadd.f32 1e-12, %v1746_v41 }
 0x8b7   :  { %2856 = vrsqrt.f32 %v1748_v58 }
 0x8bd   :  { %v2855_v46 = vpop.eup %2854 }
 0x8be   :  { %v1751_v60 = vmul.f32 %v2855_v46, %v1735_v49 }
 0x8c0   :  { %v1757_v62 = vmul.f32 %v2453_v59, %v1751_v60  ;;  %v2011_v60 = vld [vmem:[#allocation7 + $0xa8] sm:$0xff] }
 0x8c1   :  { %v2857_v63 = vpop.eup %2856 }
 0x8c2   :  { %v1752_v0 = vmul.f32 %v2857_v63, %v1736_v47  ;;  %v1763_v1 = vadd.f32 %v2454_v61, %v1757_v62  ;;  %v2458_v47 = vld [vmem:[#allocation8 + $0x7] ss:$0 sm:$0xff]  ;;  %v2215_v63 = vld [vmem:[#allocation7 + $0xe8] sm:$0xff] }
 0x8c3   :  { %v2214_v62 = vld [vmem:[#allocation7 + $0xe0] sm:$0xff] }
 0x8c4   :  { %v1758_v2 = vmul.f32 %v2453_v59, %v1752_v0  ;;  %2665 = vmatprep.mubr.msk.f32.mxu1 %vm80_vm0, %v1763_v1  ;;  %v2010_v59 = vld [vmem:[#allocation7 + $0xa0] sm:$0xff]  ;;  %v2012_v0 = vld [vmem:[#allocation7 + $0xb0] sm:$0xff] }
 0x8c6   :  { %v1764_v3 = vadd.f32 %v2454_v61, %v1758_v2  ;;  %v2771_v61 = vpack.c.bf16 %v2011_v60, %v2010_v59  ;;  %v2788_v2 = vpack.c.bf16 %v2215_v63, %v2214_v62  ;;  %v2299_v63 = vld [vmem:[#allocation7 + $0x110] sm:$0xff] }
 0x8c8   :  { %2666 = vmatmul.mubr.msk.f32.vlgmr.msra.gmra.mrb[18].mxu1 %vm80_vm0, %v1764_v3  ;;  %2772 = vmatprep.subr.bf16.mxu1 %v2771_v61 }
 0x8c9   :  { %2774 = vmatpush3.bf16.msra.mxu1 %v2771_v61 }
 0x99b   :  { %v2667_v17 = vpop.f32.mrb[18].mxu1 }
 0x99c   :  { %v1852_v18 = vadd.f32 %v2667_v17, %v2455_v16  ;;  %v1846_v19 = vpop.f32.mrb[19].mxu1 }
 0x99d   :  { %v1847_v20 = vadd.f32 %v2455_v16, %v1846_v19 }
 0x99e   :  { %v1856_v21 = vmul.f32 %v1852_v18, %v1852_v18 }
 0x99f   :  { %v1855_v22 = vmul.f32 %v1847_v20, %v1847_v20 }
 0x9a0   :  { %v1858_v23 = vmul.f32 %v1856_v21, %v1852_v18 }
 0x9a1   :  { %v1857_v24 = vmul.f32 %v1855_v22, %v1847_v20 }
 0x9a2   :  { %v1860_v25 = vmul.f32 0.044715, %v1858_v23 }
 0x9a3   :  { %v1859_v26 = vmul.f32 0.044715, %v1857_v24 }
 0x9a4   :  { %v1862_v27 = vadd.f32 %v1860_v25, %v1852_v18 }
 0x9a5   :  { %v1861_v28 = vadd.f32 %v1859_v26, %v1847_v20  ;;  %v2118_v26 = vld [vmem:[#allocation7 + $0xc0] sm:$0xff] }
 0x9a6   :  { %v1864_v48 = vmul.f32 0.7978846, %v1862_v27  ;;  %v2119_v27 = vld [vmem:[#allocation7 + $0xc8] sm:$0xff] }
 0x9a7   :  { %v1863_v29 = vmul.f32 0.7978846, %v1861_v28  ;;  %v2779_v28 = vpack.c.bf16 %v2119_v27, %v2118_v26 }
 0x9a8   :  { %2858 = vtanh.f32 %v1864_v48  ;;  %v2120_v48 = vld [vmem:[#allocation7 + $0xd0] sm:$0xff] }
 0x9a9   :  { %2860 = vtanh.f32 %v1863_v29  ;;  %v2121_v29 = vld [vmem:[#allocation7 + $0xd8] sm:$0xff] }
 0x9b2   :  { %v2859_v45 = vpop.eup %2858 }
 0x9b3   :  { %v2861_v30 = vpop.eup %2860  ;;  %v1868_v31 = vadd.f32 1.0, %v2859_v45  ;;  %v2783_v45 = vpack.c.bf16 %v2121_v29, %v2120_v48 }
 0x9b4   :  { %v1867_v32 = vadd.f32 1.0, %v2861_v30  ;;  %v2463_v30 = vld [vmem:[#allocation8 + $0xa] ss:$0 sm:$0xff] }
 0x9b5   :  { %v1870_v34 = vmul.f32 0.5, %v1868_v31 }
 0x9b6   :  { %v1869_v37 = vmul.f32 0.5, %v1867_v32 }
 0x9b7   :  { %v1872_v39 = vmul.f32 %v1870_v34, %v1852_v18  ;;  %v2462_v18 = vld [vmem:[#allocation8 + $0x9] ss:$0 sm:$0xff] }
 0x9b8   :  { %v1871_v38 = vmul.f32 %v1869_v37, %v1847_v20 }
 0x9ba   :  { %2684 = vmatprep.mubr.msk.f32.mxu0 %vm1886_vm5, %v1871_v38 }
 0x9bb   :  { %2685 = vmatmul.mubr.msk.f32.vlgmr.msra.gmra.mrb[18].mxu0 %vm1886_vm5, %v1872_v39 }
 0x9bc   :  { %2717 = vmatprep.mubr.msk.f32.mxu0 %vm3023_vm1, %v3022_v36 }
 0xa8e   :  { %v2686_v49 = vpop.f32.mrb[18].mxu0 }
 0xa8f   :  { %v1965_v50 = vadd.f32 %v2686_v49, %v2458_v47  ;;  %v1959_v51 = vpop.f32.mrb[19].mxu0 }
 0xa90   :  { %v1960_v52 = vadd.f32 %v2458_v47, %v1959_v51 }
 0xa91   :  { %v1969_v35 = vadd.f32 %v1965_v50, %v1764_v3  ;;  %v2013_v3 = vld [vmem:[#allocation7 + $0xb8] sm:$0xff] }
 0xa92   :  { %v1968_v33 = vadd.f32 %v1960_v52, %v1763_v1  ;;  %v3030_v1 = vmov 0.0|0.0   ;;  %v2775_v6 = vpack.c.bf16 %v2013_v3, %v2012_v0  ;;  %v2300_v0 = vld [vmem:[#allocation7 + $0x118] sm:$0xff] }
 0xa93   :  { %v1975_v53 = vsel %vm80_vm0, %v1969_v35, 0.0  ;;  %2787 = vmatprep.subr.bf16.mxu0 %v3030_v1 }
 0xa94   :  { %1976 = vadd.xlane.f32.xlu1 %v1975_v53  ;;  %v1972_v43 = vsel %vm80_vm0, %v1968_v33, 0.0  ;;  %2789 = vmatpush3.bf16.msra.mxu0 %v2788_v2  ;;  %v2797_v2 = vpack.c.bf16 %v2300_v0, %v2299_v63 }
 0xa95   :  { %1973 = vadd.xlane.f32.xlu0 %v1972_v43  ;;  %2776 = vmatprep.subr.bf16.mxu1 %v2775_v6 }
 0xa96   :  { %2790 = vmatprep.subr.bf16.mxu0 %v3030_v1  ;;  %2778 = vmatpush3.bf16.msra.mxu1 %v2775_v6 }
 0xa97   :  { %2780 = vmatprep.subr.bf16.mxu1 %v2779_v28 }
 0xa98   :  { %2792 = vmatpush3.bf16.msra.mxu0 %v2791_v7 }
 0xb21   :  { %v1977_v42 = vpop.xlane.xlu1 %1976 }
 0xb22   :  { %v1979_v40 = vmul.f32 0.03125, %v1977_v42  ;;  %v1974_v54 = vpop.xlane.xlu0 %1973 }
 0xb23   :  { %v1978_v55 = vmul.f32 0.03125, %v1974_v54 }
 0xb24   :  { %v1981_v44 = vsub.f32 %v1969_v35, %v1979_v40  ;;  %v2469_v40 = vld [vmem:[#allocation8 + $0xc] ss:$0 sm:$0xff] }
 0xb25   :  { %v1980_v56 = vsub.f32 %v1968_v33, %v1978_v55 }
 0xb26   :  { %v1983_v57 = vmul.f32 %v1981_v44, %v1981_v44 }
 0xb27   :  { %v1982_v41 = vmul.f32 %v1980_v56, %v1980_v56 }
 0xb28   :  { %v1987_v58 = vsel %vm80_vm0, %v1983_v57, 0.0 }
 0xb29   :  { %1988 = vadd.xlane.f32.xlu1 %v1987_v58  ;;  %v1984_v46 = vsel %vm80_vm0, %v1982_v41, 0.0  ;;  %v2297_v58 = vld [vmem:[#allocation7 + $0x100] sm:$0xff] }
 0xb2a   :  { %1985 = vadd.xlane.f32.xlu0 %v1984_v46  ;;  %v2298_v46 = vld [vmem:[#allocation7 + $0x108] sm:$0xff] }
 0xb2b   :  { %v2794_v61 = vpack.c.bf16 %v2298_v46, %v2297_v58 }
 0xbb6   :  { %v1989_v8 = vpop.xlane.xlu1 %1988 }
 0xbb7   :  { %v1991_v9 = vmul.f32 0.03125, %v1989_v8  ;;  %v1986_v10 = vpop.xlane.xlu0 %1985 }
 0xbb8   :  { %v1990_v11 = vmul.f32 0.03125, %v1986_v10 }
 0xbb9   :  { %v1993_v12 = vadd.f32 1e-12, %v1991_v9 }
 0xbba   :  { %v1992_v13 = vadd.f32 1e-12, %v1990_v11 }
 0xbbb   :  { %2862 = vrsqrt.f32 %v1993_v12 }
 0xbbc   :  { %2864 = vrsqrt.f32 %v1992_v13 }
 0xbc5   :  { %v2863_v14 = vpop.eup %2862 }
 0xbc6   :  { %v2865_v16 = vpop.eup %2864  ;;  %v1997_v17 = vmul.f32 %v2863_v14, %v1981_v44 }
 0xbc7   :  { %v1996_v19 = vmul.f32 %v2865_v16, %v1980_v56 }
 0xbc8   :  { %v2003_v20 = vmul.f32 %v2461_v15, %v1997_v17 }
 0xbc9   :  { %v2002_v21 = vmul.f32 %v2461_v15, %v1996_v19 }
 0xbca   :  { %v2009_v22 = vadd.f32 %v2462_v18, %v2003_v20 }
 0xbcb   :  { %v2008_v23 = vadd.f32 %v2462_v18, %v2002_v21 }
 0xbcc   :  { %v2210_v24 = vrot.slane %v2009_v22, 7 }
 0xbcd   :  { %2695 = vmatprep.mubr.msk.f32.mxu1 %vm80_vm0, %v2008_v23 }
 0xbce   :  { %2696 = vmatmul.mubr.msk.f32.vlgmr.msra.gmra.mrb[20].mxu1 %vm80_vm0, %v2009_v22  ;;  %v2213_v25 = vsel %vm2212_vm6, %v2008_v23, %v2210_v24 }
 0xbcf   :  { %2718 = vmatmul.mubr.msk.f32.vlgmr.msra.gmra.mrb[20].mxu0 %vm80_vm0, %v2213_v25  ;;  %2782 = vmatpush3.bf16.msra.mxu1 %v2779_v28 }
 0xbd0   :  { %2784 = vmatprep.subr.bf16.mxu1 %v2783_v45 }
 0xbd3   :  { %2786 = vmatpush3.bf16.msra.mxu1 %v2783_v45 }
 0xbd4   :  { %2793 = vmatprep.subr.bf16.mxu1 %v3030_v1 }
 0xca1   :  { %v2697_v31 = vpop.f32.mrb[20].mxu1 }
 0xca2   :  { %v2097_v32 = vadd.f32 %v2697_v31, %v2463_v30  ;;  %v2091_v34 = vpop.f32.mrb[21].mxu1  ;;  %v2292_v37 = vpop.f32.mrb[20].mxu0 }
 0xca3   :  { %v2092_v38 = vadd.f32 %v2463_v30, %v2091_v34  ;;  %v2719_v39 = vpop.f32.mrb[21].mxu0  ;;  %v2293_v56 = vadd.f32 %v2469_v40, %v2292_v37 }
 0xca4   :  { %v2101_v47 = vmul.f32 %v2097_v32, %v2097_v32 }
 0xca5   :  { %v2100_v49 = vmul.f32 %v2092_v38, %v2092_v38 }
 0xca6   :  { %v2103_v50 = vmul.f32 %v2101_v47, %v2097_v32 }
 0xca7   :  { %v2102_v51 = vmul.f32 %v2100_v49, %v2092_v38 }
 0xca8   :  { %v2105_v52 = vmul.f32 0.044715, %v2103_v50 }
 0xca9   :  { %v2104_v35 = vmul.f32 0.044715, %v2102_v51 }
 0xcaa   :  { %v2107_v33 = vadd.f32 %v2105_v52, %v2097_v32 }
 0xcab   :  { %v2106_v53 = vadd.f32 %v2104_v35, %v2092_v38 }
 0xcac   :  { %v2109_v43 = vmul.f32 0.7978846, %v2107_v33 }
 0xcad   :  { %v2108_v42 = vmul.f32 0.7978846, %v2106_v53 }
 0xcae   :  { %2866 = vtanh.f32 %v2109_v43 }
 0xcaf   :  { %2868 = vtanh.f32 %v2108_v42 }
 0xcb0   :  { %2870 = vtanh.f32 %v2293_v56 }
 0xcb8   :  { %v2867_v54 = vpop.eup %2866 }
 0xcb9   :  { %v2869_v55 = vpop.eup %2868  ;;  %v2113_v44 = vadd.f32 1.0, %v2867_v54 }
 0xcba   :  { %v2112_v57 = vadd.f32 1.0, %v2869_v55  ;;  %v2871_v3 = vpop.eup %2870 }
 0xcbb   :  { %v2115_v41 = vmul.f32 0.5, %v2113_v44 }
 0xcbc   :  { %v2114_v59 = vmul.f32 0.5, %v2112_v57 }
 0xcbd   :  { %v2117_v62 = vmul.f32 %v2115_v41, %v2097_v32 }
 0xcbe   :  { %v2116_v60 = vmul.f32 %v2114_v59, %v2092_v38 }
 0xcc0   :  { %2706 = vmatprep.mubr.msk.f32.mxu1 %vm80_vm0, %v2116_v60 }
 0xcc1   :  { %2707 = vmatmul.mubr.msk.f32.vlgmr.msra.gmra.mrb[22].mxu1 %vm80_vm0, %v2117_v62 }
 0xcc2   :  { %2795 = vmatpush3.bf16.msra.mxu1 %v2794_v61  ;;  %2728 = vmatprep.mubr.msk.f32.mxu1 %vm3023_vm1, %v3022_v36 }
 0xcc3   :  { %2796 = vmatprep.subr.bf16.mxu1 %v3030_v1 }
 0xcc6   :  { %2798 = vmatpush3.bf16.msra.mxu1 %v2797_v2 }
 0xcc9   :  { %2729 = vmatmul.mubr.msk.f32.vlgmr.msra.gmra.mrb[24].mxu1 %vm80_vm0, %v2871_v3 }
 0xd94   :  { %v2708_v5 = vpop.f32.mrb[22].mxu1 }
 0xd95   :  { %v2205_v6 = vadd.f32 %v2708_v5, %v2466_v4  ;;  %v2199_v7 = vpop.f32.mrb[23].mxu1 }
 0xd96   :  { %v2200_v8 = vadd.f32 %v2466_v4, %v2199_v7 }
 0xd97   :  { %2209 = vst [vmem:[#allocation10 + $0x8] sm:$0xff] %v2205_v6 }
 0xd98   :  { %2208 = vst [vmem:[#allocation10] sm:$0xff] %v2200_v8 }
 0xd99   :  { %2971 = shalt.err (!%p2968_p8)
}
 0xd9a   :  { %s2972_s29 = scalar_lea.hbm %s3360_s4, 256 }
 0xd9b   :  { %p2973_p9 = scmp.ne.s32.totalorder %s3360_s4, %s2972_s29  ;;  %p2976_p10 = scmp.lt.u32.totalorder %s2972_s29, %s3360_s4 }
 0xd9d   :  { %p2978_p11 = pnand %p2976_p10, %p2973_p9 }
 0xd9f   :  { %2981 = shalt.err (!%p2978_p11)
}
 0xda0   :  { %2391 = dma.vmem_to_hbm [thread:$0]  %s2386_s24, 256, %s3360_s4, [#allocation4], %s3018_s1, %s3018_s1, %s3019_s17   ;;  %v2471_v36 = vld [vmem:[#allocation8 + $0xd] ss:$0 sm:$0xff]  ;;  %v2375_v1 = vpop.f32.mrb[24].mxu1 }
 0xda1   :  { %s3032_s10 = smov [#allocation11]   ;;  %v2376_v9 = vadd.f32 %v2471_v36, %v2375_v1  ;;  %v2730_v10 = vpop.f32.mrb[25].mxu1 }
 0xda2   :  { %s2398_s11 = sshll.u32 %s3032_s10, 4  ;;  %s2399_s11 = int_to_ptr.vmem [resolvable:$true] %s2398_s11 }
 0xda3   :  { %2379 = vst [vmem:[#allocation11] sm:$0x3] %v2376_v9  ;;  %s2982_s12 = scalar_lea.vmem %s2399_s11, 32  ;;  %p2987_p13 = scmp.lt.s32.totalorder %s2399_s11, %s2399_s11 }
 0xda4   :  { %p2983_p12 = scmp.ne.s32.totalorder %s2399_s11, %s2982_s12  ;;  %p2988_p0 = scmp.lt.s32.totalorder %s2982_s12, %s2982_s12 }
 0xda6   :  { %p2989_p1 = por %p2988_p0, %p2987_p13 }
 0xda8   :  { %p2990_p2 = pnand %p2989_p1, %p2983_p12 }
 0xdaa   :  { %2993 = shalt.err (!%p2990_p2)
}
 0xdab   :  { %s2994_s15 = scalar_lea.hbm %s3361_s5, 32 }
 0xdac   :  { %p2995_p3 = scmp.ne.s32.totalorder %s3361_s5, %s2994_s15  ;;  %p2998_p4 = scmp.lt.u32.totalorder %s2994_s15, %s3361_s5 }
 0xdae   :  { %p3000_p5 = pnand %p2998_p4, %p2995_p3 }
 0xdb0   :  { %3003 = shalt.err (!%p3000_p5)
}
 0xdb1   :  { %2401 = dma.vmem_to_hbm [thread:$0]  %s2399_s11, 32, %s3361_s5, [#allocation12]  }
 0xdb2   :  { %3010 = dma.done.wait [#allocation4], 256  }
 0xdb3   :  { %3011 = vsyncadd [#allocation4], 4294967040 }
 0xdb4   :  { %3012 = dma.done.wait [#allocation12], 32  }
 0xdb5   :  { %3013 = vsyncadd [#allocation12], 4294967264 }
 0xdb6   :  { %2408 = vsyncpa [#allocation3], 1 }
 0xdb7   :  { %2409 = vsyncpa [#allocation6], 1 }
 0xdb8   :  { %2410 = vsyncpa [#allocation9], 1 }
 0xdb9   :  { %2411 = vsyncpa [#allocation4], 1 }
 0xdba   :  { %2412 = vsyncpa [#allocation12], 1 }

</bundles_post_ra>
